<compile_context>
chip_gen: v6e
topology: v6e:2x2x1
jax: 0.10.0
libtpu: 0.0.40
codegen_flags: <defaults>
</compile_context>

<pallas_src>
import jax
import jax.numpy as jnp
from jax.experimental import pallas as pl
from jax.experimental.pallas import tpu as pltpu


# --------------------------------------------------------------------------
# Kernel
# --------------------------------------------------------------------------
def _cbam_kernel(x_ref, w1t_ref, b1_ref, w2t_ref, b2_ref, cm_ref, cb_ref,
                 out_ref):
    """One grid step processes a (block_b, C, HW) slab of images, batched."""
    bb = x_ref.shape[0]

    x = x_ref[...]                                        # (bb, C, HW) f32

    # ------------------- channel attention -------------------
    avg_v = jnp.mean(x, axis=2)                           # (bb, C)  lane reduce
    max_v = jnp.max(x, axis=2)                            # (bb, C)
    v = jnp.concatenate([avg_v, max_v], axis=0)           # (2*bb, C) single MLP LHS

    h = jnp.dot(v, w1t_ref[...], preferred_element_type=jnp.float32,
                precision=jax.lax.Precision.HIGHEST) + b1_ref[...]   # (2*bb, hid)
    h = jnp.maximum(h, 0.0)
    z = jnp.dot(h, w2t_ref[...], preferred_element_type=jnp.float32,
                precision=jax.lax.Precision.HIGHEST) + b2_ref[...]   # (2*bb, C)

    ca = jax.nn.sigmoid(z[:bb] + z[bb:])                  # (bb, C)   avg+max fused
    x_ca = x * ca[:, :, None]                             # (bb, C, HW)

    # ------------------- spatial attention -------------------
    # NOTE: if the XLU ever saturates at large block_b, the channel-axis mean
    # (sublane reduce) can be moved onto the otherwise-idle MXU via a ones-
    # vector matmul; max stays on the XLU.
    mean_map = jnp.mean(x_ca, axis=1)                     # (bb, HW)
    max_map = jnp.max(x_ca, axis=1)                       # (bb, HW)
    s = jnp.concatenate([mean_map, max_map], axis=1)      # (bb, 2*HW)

    # Whole 7x7/pad-3 conv for all block_b images = ONE matmul against the
    # fused (2*HW, HW) matrix.  DEFAULT precision: the result only feeds a
    # sigmoid, bf16 MXU passes are numerically plenty (review item).
    conv = jnp.dot(s, cm_ref[...],
                   preferred_element_type=jnp.float32) + cb_ref[0]   # (bb, HW)
    sa = jax.nn.sigmoid(conv)

    out_ref[...] = (x_ca * sa[:, None, :]).astype(out_ref.dtype)


# --------------------------------------------------------------------------
# Wrapper-side helpers
# --------------------------------------------------------------------------
def _build_conv_matrix(cw, H, W):
    """Analytically linearize the 7x7 / padding=3 conv into one (2*HW, HW)
    matrix M such that  conv_flat = [mean_flat | max_flat] @ M + bias.
    Built by scattering the 49 taps (no identity-basis conv)."""
    HW = H * W
    w = jnp.asarray(cw, jnp.float32).reshape(2, 7, 7)
    dy = jnp.arange(H)[:, None] - jnp.arange(H)[None, :] + 3      # (H,H) [iy,oy]
    dx = jnp.arange(W)[:, None] - jnp.arange(W)[None, :] + 3      # (W,W) [ix,ox]
    vy = (dy >= 0) & (dy < 7)
    vx = (dx >= 0) & (dx < 7)
    dyc = jnp.clip(dy, 0, 6)
    dxc = jnp.clip(dx, 0, 6)
    # taps[c, iy, ix, oy, ox] = w[c, iy-oy+3, ix-ox+3]
    taps = w[:, dyc[:, None, :, None], dxc[None, :, None, :]]     # (2,H,W,H,W)
    valid = (vy[:, None, :, None] & vx[None, :, None, :])[None]   # (1,H,W,H,W)
    m = jnp.where(valid, taps, 0.0)
    return m.reshape(2 * HW, HW)


def prepare_cbam_params(params, H, W):
    """Precompute kernel-side parameters ONCE per (weights, H, W):
    transposed MLP weights, row biases, fused conv matrix, conv bias."""
    w1, b1, w2, b2, cw, cb = params
    w1t = jnp.asarray(w1, jnp.float32).T                  # (C, hid)
    w2t = jnp.asarray(w2, jnp.float32).T                  # (hid, C)
    b1r = jnp.asarray(b1, jnp.float32).reshape(1, -1)     # (1, hid)
    b2r = jnp.asarray(b2, jnp.float32).reshape(1, -1)     # (1, C)
    cm = _build_conv_matrix(cw, H, W)                     # (2*HW, HW)
    cbr = jnp.asarray(cb, jnp.float32).reshape(1)         # (1,)
    return (w1t, b1r, w2t, b2r, cm, cbr)


def _choose_block_b(B, C, HW, target_bytes=512 * 1024):
    """Largest divisor of B that (a) keeps the x slab near ~0.5 MiB and
    (b) keeps the grid length >= 2 (v7x has 2 TensorCores)."""
    per_img = C * HW * 4
    want = max(1, target_bytes // per_img)
    cap = max(1, B // 2)
    best = 1
    for d in range(1, B + 1):
        if B % d == 0 and d <= min(want, cap):
            best = d
    return best


def cbam_forward(x, prepared, *, block_b=None):
    """x: (B, C, H, W) f32.  prepared: output of prepare_cbam_params."""
    B, C, H, W = x.shape
    HW = H * W
    w1t, b1, w2t, b2, cm, cb = prepared
    hid = w1t.shape[1]

    if block_b is None:
        block_b = _choose_block_b(B, C, HW)
    assert B % block_b == 0, (B, block_b)

    # ---- VMEM budget (review: dense conv matrix grows as HW^2) ----
    xblock_bytes = block_b * C * HW * 4
    conv_bytes = 2 * HW * HW * 4                       # single-buffered (Buffered(1))
    small = 4 * (w1t.size + b1.size + w2t.size + b2.size)
    vmem_needed = 4 * xblock_bytes + conv_bytes + 2 * small   # in+out double-buffered
    assert vmem_needed < 48 * 1024 * 1024, (
        "feature map too large for the dense conv-matrix path; "
        "use a banded / pltpu.roll 49-tap spatial conv instead")
    vmem_limit = vmem_needed + (4 << 20) if vmem_needed > (12 << 20) else None

    x_flat = x.reshape(B, C, HW)    # lane-dense last dim (HW multiple of 128 here)

    grid_spec = pltpu.PrefetchScalarGridSpec(
        num_scalar_prefetch=0,
        grid=(B // block_b,),
        in_specs=[
            pl.BlockSpec((block_b, C, HW), lambda b: (b, 0, 0)),       # x slab
            pl.BlockSpec((C, hid), lambda b: (0, 0)),                  # mlp w1^T
            pl.BlockSpec((1, hid), lambda b: (0, 0)),                  # mlp b1
            pl.BlockSpec((hid, C), lambda b: (0, 0)),                  # mlp w2^T
            pl.BlockSpec((1, C), lambda b: (0, 0)),                    # mlp b2
            # Constant-index conv matrix: no need to double-buffer it.
            pl.BlockSpec((2 * HW, HW), lambda b: (0, 0),
                         pipeline_mode=pl.Buffered(1)),                # fused conv mat
            pl.BlockSpec(memory_space=pltpu.SMEM),                     # conv bias (1,)
        ],
        out_specs=pl.BlockSpec((block_b, C, HW), lambda b: (b, 0, 0)),
    )

    out_flat = pl.pallas_call(
        _cbam_kernel,
        out_shape=jax.ShapeDtypeStruct((B, C, HW), x.dtype),
        grid_spec=grid_spec,
        compiler_params=pltpu.CompilerParams(
            dimension_semantics=("parallel",),
            vmem_limit_bytes=vmem_limit),
    )(x_flat, w1t, b1, w2t, b2, cm, cb)
    return out_flat.reshape(B, C, H, W)


# --------------------------------------------------------------------------
# Pure-JAX reference mirroring the PyTorch module semantics
# --------------------------------------------------------------------------
def cbam_reference(x, params):
    w1, b1, w2, b2, cw, cb = params
    b1 = jnp.reshape(b1, (-1,))
    b2 = jnp.reshape(b2, (-1,))
    avg = jnp.mean(x, axis=(2, 3))                                 # (B, C)
    mx = jnp.max(x, axis=(2, 3))                                   # (B, C)

    def mlp(v):
        h = jnp.maximum(
            jnp.dot(v, w1.T, precision=jax.lax.Precision.HIGHEST) + b1, 0.0)
        return jnp.dot(h, w2.T, precision=jax.lax.Precision.HIGHEST) + b2

    ca = jax.nn.sigmoid(mlp(avg) + mlp(mx))[:, :, None, None]
    xc = x * ca
    s_in = jnp.concatenate(
        [jnp.mean(xc, axis=1, keepdims=True),
         jnp.max(xc, axis=1, keepdims=True)], axis=1)
    kern = jnp.asarray(cw, jnp.float32).reshape(1, 2, 7, 7)
    conv = jax.lax.conv_general_dilated(
        s_in, kern, window_strides=(1, 1), padding=[(3, 3), (3, 3)],
        dimension_numbers=("NCHW", "OIHW", "NCHW"),
        precision=jax.lax.Precision.HIGHEST) + jnp.reshape(cb, (-1,))[0]
    sa = jax.nn.sigmoid(conv)
    return xc * sa


# --------------------------------------------------------------------------
if __name__ == "__main__":
    B, C, H, W, r = 8, 32, 16, 16, 16
    hid = max(1, C // r)

    key = jax.random.PRNGKey(0)
    k = jax.random.split(key, 7)
    x = jax.random.normal(k[0], (B, C, H, W), jnp.float32)
    # Deterministic synthetic parameters (shapes from the PyTorch __init__).
    w1 = jax.random.normal(k[1], (hid, C), jnp.float32) * 0.1      # Linear(ch, ch//r).weight
    b1 = jax.random.normal(k[2], (hid,), jnp.float32) * 0.1        # Linear(ch, ch//r).bias
    w2 = jax.random.normal(k[3], (C, hid), jnp.float32) * 0.1      # Linear(ch//r, ch).weight
    b2 = jax.random.normal(k[4], (C,), jnp.float32) * 0.1          # Linear(ch//r, ch).bias
    cw = jax.random.normal(k[5], (2 * 7 * 7,), jnp.float32) * 0.1  # Conv2d(2,1,7).weight flat
    cb = jax.random.normal(k[6], (1,), jnp.float32) * 0.1          # Conv2d(2,1,7).bias
    params = (w1, b1, w2, b2, cw, cb)

    # Precompute once (hoisted out of the per-call path per review).
    prepared = prepare_cbam_params(params, H, W)

    ref = cbam_reference(x, params)
    jax.block_until_ready(ref)

    # Auto block_b: 4 images per grid step here -> grid = 2 (both v7x TCs busy).
    out = cbam_forward(x, prepared)
    jax.block_until_ready(out)
    assert out.shape == (B, C, H, W)
    err = float(jnp.max(jnp.abs(out - ref)))
    assert jnp.allclose(out, ref, atol=2e-3, rtol=2e-3), err

    # Also exercise the block_b=1 path (degenerate batching still batched math).
    out1 = cbam_forward(x, prepared, block_b=1)
    jax.block_until_ready(out1)
    err1 = float(jnp.max(jnp.abs(out1 - ref)))
    assert jnp.allclose(out1, ref, atol=2e-3, rtol=2e-3), err1

    print("KERNEL_OK")
</pallas_src>

<mosaic_0001>
module attributes {stable_mosaic.version = 11 : i64} {
  func.func @_cbam_kernel(%arg0: i32, %arg1: memref<4x32x256xf32, #tpu.memory_space<vmem>>, %arg2: memref<32x2xf32, #tpu.memory_space<vmem>>, %arg3: memref<1x2xf32, #tpu.memory_space<vmem>>, %arg4: memref<2x32xf32, #tpu.memory_space<vmem>>, %arg5: memref<1x32xf32, #tpu.memory_space<vmem>>, %arg6: memref<512x256xf32, #tpu.memory_space<vmem>>, %arg7: memref<1xf32, #tpu.memory_space<smem>>, %arg8: memref<4x32x256xf32, #tpu.memory_space<vmem>>) attributes {dimension_semantics = [#tpu.dimension_semantics<parallel>], iteration_bounds = array<i64: 2>, scalar_prefetch = 0 : i64, scratch_operands = 0 : i64, tpu.core_type = #tpu.core_type<tc>, window_params = [{transform_indices = @transform_0, window_bounds = array<i64: 4, 32, 256>}, {pipeline_mode = #tpu.pipeline_mode<synchronous>, transform_indices = @transform_1, window_bounds = array<i64: 32, 2>}, {pipeline_mode = #tpu.pipeline_mode<synchronous>, transform_indices = @transform_2, window_bounds = array<i64: 1, 2>}, {pipeline_mode = #tpu.pipeline_mode<synchronous>, transform_indices = @transform_3, window_bounds = array<i64: 2, 32>}, {pipeline_mode = #tpu.pipeline_mode<synchronous>, transform_indices = @transform_4, window_bounds = array<i64: 1, 32>}, {pipeline_mode = #tpu.pipeline_mode<synchronous>, transform_indices = @transform_5, window_bounds = array<i64: 512, 256>}, {transform_indices = @transform_6, window_bounds = array<i64: 1>}, {transform_indices = @transform_7, window_bounds = array<i64: 4, 32, 256>}]} {
    %c0 = arith.constant 0 : index
    %c0_0 = arith.constant 0 : index
    %c0_1 = arith.constant 0 : index
    %0 = vector.load %arg1[%c0, %c0_0, %c0_1] : memref<4x32x256xf32, #tpu.memory_space<vmem>>, vector<4x32x256xf32>
    %cst = arith.constant dense<0.000000e+00> : vector<4x32xf32>
    %1 = vector.multi_reduction <add>, %0, %cst [2] : vector<4x32x256xf32> to vector<4x32xf32>
    %cst_2 = arith.constant 2.560000e+02 : f32
    %2 = vector.broadcast %cst_2 : f32 to vector<4x32xf32>
    %3 = arith.divf %1, %2 : vector<4x32xf32>
    %cst_3 = arith.constant dense<0xFF800000> : vector<4x32xf32>
    %4 = vector.multi_reduction <maximumf>, %0, %cst_3 [2] : vector<4x32x256xf32> to vector<4x32xf32>
    %5 = tpu.concatenate %3, %4 in 0 : vector<4x32xf32>, vector<4x32xf32> -> vector<8x32xf32>
    %c0_4 = arith.constant 0 : index
    %c0_5 = arith.constant 0 : index
    %6 = vector.load %arg2[%c0_4, %c0_5] : memref<32x2xf32, #tpu.memory_space<vmem>>, vector<32x2xf32>
    %cst_6 = arith.constant dense<0.000000e+00> : vector<8x2xf32>
    %7 = tpu.matmul %5, %6, %cst_6 {dimension_numbers = #tpu.dot_dimension_numbers<[1], [0], [0], [1], [0, 0, 1, 1], [], []>, precision = #tpu.contract_precision<fp32>} : vector<8x32xf32>, vector<32x2xf32>, vector<8x2xf32> -> vector<8x2xf32>
    %c0_7 = arith.constant 0 : index
    %c0_8 = arith.constant 0 : index
    %8 = vector.load %arg3[%c0_7, %c0_8] : memref<1x2xf32, #tpu.memory_space<vmem>>, vector<1x2xf32>
    %9 = vector.broadcast %8 : vector<1x2xf32> to vector<8x2xf32>
    %10 = arith.addf %7, %9 : vector<8x2xf32>
    %cst_9 = arith.constant 0.000000e+00 : f32
    %11 = vector.broadcast %cst_9 : f32 to vector<8x2xf32>
    %12 = arith.maximumf %10, %11 : vector<8x2xf32>
    %c0_10 = arith.constant 0 : index
    %c0_11 = arith.constant 0 : index
    %13 = vector.load %arg4[%c0_10, %c0_11] : memref<2x32xf32, #tpu.memory_space<vmem>>, vector<2x32xf32>
    %cst_12 = arith.constant dense<0.000000e+00> : vector<8x32xf32>
    %14 = tpu.matmul %12, %13, %cst_12 {dimension_numbers = #tpu.dot_dimension_numbers<[1], [0], [0], [1], [0, 0, 1, 1], [], []>, precision = #tpu.contract_precision<fp32>} : vector<8x2xf32>, vector<2x32xf32>, vector<8x32xf32> -> vector<8x32xf32>
    %c0_13 = arith.constant 0 : index
    %c0_14 = arith.constant 0 : index
    %15 = vector.load %arg5[%c0_13, %c0_14] : memref<1x32xf32, #tpu.memory_space<vmem>>, vector<1x32xf32>
    %16 = vector.broadcast %15 : vector<1x32xf32> to vector<8x32xf32>
    %17 = arith.addf %14, %16 : vector<8x32xf32>
    %18 = vector.extract_strided_slice %17 {offsets = [0, 0], sizes = [4, 32], strides = [1, 1]} : vector<8x32xf32> to vector<4x32xf32>
    %19 = vector.extract_strided_slice %17 {offsets = [4, 0], sizes = [4, 32], strides = [1, 1]} : vector<8x32xf32> to vector<4x32xf32>
    %20 = arith.addf %18, %19 : vector<4x32xf32>
    %21 = arith.negf %20 : vector<4x32xf32>
    %22 = math.exp %21 : vector<4x32xf32>
    %cst_15 = arith.constant 1.000000e+00 : f32
    %23 = vector.broadcast %cst_15 : f32 to vector<4x32xf32>
    %24 = arith.addf %23, %22 : vector<4x32xf32>
    %25 = arith.divf %23, %24 : vector<4x32xf32>
    %26 = vector.shape_cast %25 : vector<4x32xf32> to vector<4x32x1xf32>
    %27 = vector.broadcast %26 : vector<4x32x1xf32> to vector<4x32x256xf32>
    %28 = arith.mulf %0, %27 : vector<4x32x256xf32>
    %cst_16 = arith.constant dense<0.000000e+00> : vector<4x256xf32>
    %29 = vector.multi_reduction <add>, %28, %cst_16 [1] : vector<4x32x256xf32> to vector<4x256xf32>
    %cst_17 = arith.constant 3.200000e+01 : f32
    %30 = vector.broadcast %cst_17 : f32 to vector<4x256xf32>
    %31 = arith.divf %29, %30 : vector<4x256xf32>
    %cst_18 = arith.constant dense<0xFF800000> : vector<4x256xf32>
    %32 = vector.multi_reduction <maximumf>, %28, %cst_18 [1] : vector<4x32x256xf32> to vector<4x256xf32>
    %33 = tpu.concatenate %31, %32 in 1 : vector<4x256xf32>, vector<4x256xf32> -> vector<4x512xf32>
    %c0_19 = arith.constant 0 : index
    %c0_20 = arith.constant 0 : index
    %34 = vector.load %arg6[%c0_19, %c0_20] : memref<512x256xf32, #tpu.memory_space<vmem>>, vector<512x256xf32>
    %cst_21 = arith.constant dense<0.000000e+00> : vector<4x256xf32>
    %35 = tpu.matmul %33, %34, %cst_21 {dimension_numbers = #tpu.dot_dimension_numbers<[1], [0], [0], [1], [0, 0, 1, 1], [], []>} : vector<4x512xf32>, vector<512x256xf32>, vector<4x256xf32> -> vector<4x256xf32>
    %c0_22 = arith.constant 0 : index
    %36 = memref.load %arg7[%c0_22] : memref<1xf32, #tpu.memory_space<smem>>
    %37 = vector.broadcast %36 : f32 to vector<4x256xf32>
    %38 = arith.addf %35, %37 : vector<4x256xf32>
    %39 = arith.negf %38 : vector<4x256xf32>
    %40 = math.exp %39 : vector<4x256xf32>
    %cst_23 = arith.constant 1.000000e+00 : f32
    %41 = vector.broadcast %cst_23 : f32 to vector<4x256xf32>
    %42 = arith.addf %41, %40 : vector<4x256xf32>
    %43 = arith.divf %41, %42 : vector<4x256xf32>
    %44 = vector.shape_cast %43 : vector<4x256xf32> to vector<4x1x256xf32>
    %45 = vector.broadcast %44 : vector<4x1x256xf32> to vector<4x32x256xf32>
    %46 = arith.mulf %28, %45 : vector<4x32x256xf32>
    %c0_24 = arith.constant 0 : index
    %c0_25 = arith.constant 0 : index
    %c0_26 = arith.constant 0 : index
    %47 = vector.load %arg8[%c0_24, %c0_25, %c0_26] : memref<4x32x256xf32, #tpu.memory_space<vmem>>, vector<4x32x256xf32>
    tpu.vector_store %arg8[%c0_24, %c0_25, %c0_26], %46 {strides = array<i32>} : memref<4x32x256xf32, #tpu.memory_space<vmem>>, vector<4x32x256xf32>,
    return
  }
  func.func @transform_0(%arg0: i32) -> (i32, i32, i32) {
    %c0_i32 = arith.constant 0 : i32
    %c0_i32_0 = arith.constant 0 : i32
    %c0_i32_1 = arith.constant 0 : i32
    return %arg0, %c0_i32, %c0_i32_0 : i32, i32, i32
  }
  func.func @transform_1(%arg0: i32) -> (i32, i32) {
    %c0_i32 = arith.constant 0 : i32
    %c0_i32_0 = arith.constant 0 : i32
    %c0_i32_1 = arith.constant 0 : i32
    return %c0_i32, %c0_i32_0 : i32, i32
  }
  func.func @transform_2(%arg0: i32) -> (i32, i32) {
    %c0_i32 = arith.constant 0 : i32
    %c0_i32_0 = arith.constant 0 : i32
    %c0_i32_1 = arith.constant 0 : i32
    return %c0_i32, %c0_i32_0 : i32, i32
  }
  func.func @transform_3(%arg0: i32) -> (i32, i32) {
    %c0_i32 = arith.constant 0 : i32
    %c0_i32_0 = arith.constant 0 : i32
    %c0_i32_1 = arith.constant 0 : i32
    return %c0_i32, %c0_i32_0 : i32, i32
  }
  func.func @transform_4(%arg0: i32) -> (i32, i32) {
    %c0_i32 = arith.constant 0 : i32
    %c0_i32_0 = arith.constant 0 : i32
    %c0_i32_1 = arith.constant 0 : i32
    return %c0_i32, %c0_i32_0 : i32, i32
  }
  func.func @transform_5(%arg0: i32) -> (i32, i32) {
    %c0_i32 = arith.constant 0 : i32
    %c0_i32_0 = arith.constant 0 : i32
    %c0_i32_1 = arith.constant 0 : i32
    return %c0_i32, %c0_i32_0 : i32, i32
  }
  func.func @transform_6(%arg0: i32) -> i32 {
    %c0_i32 = arith.constant 0 : i32
    %c0_i32_0 = arith.constant 0 : i32
    return %c0_i32 : i32
  }
  func.func @transform_7(%arg0: i32) -> (i32, i32, i32) {
    %c0_i32 = arith.constant 0 : i32
    %c0_i32_0 = arith.constant 0 : i32
    %c0_i32_1 = arith.constant 0 : i32
    return %arg0, %c0_i32, %c0_i32_0 : i32, i32, i32
  }
}

</mosaic_0001>

<bundles_post_ra>
// kernel: tpu_custom_call.1
= control target key start
LH: loop header
LB: loop body
LE: loop exit
PB: predicated region body
PF: predicated region fallthrough
CT: control target
= control target key end

     0   :  { %s3660_s0 = inlined_call_operand.hbm [shape: f32[8,32,256], index: 0, kind: input, shape index: {}]   ;;  %s3661_s1 = inlined_call_operand.vmem [shape: f32[32,2], index: 1, kind: input, shape index: {}]   ;;  %s3662_s2 = inlined_call_operand.vmem [shape: f32[1,2], index: 2, kind: input, shape index: {}]   ;;  %s3663_s3 = inlined_call_operand.vmem [shape: f32[2,32], index: 3, kind: input, shape index: {}]   ;;  %s3664_s4 = inlined_call_operand.vmem [shape: f32[1,32], index: 4, kind: input, shape index: {}]   ;;  %s3665_s5 = inlined_call_operand.hbm [shape: f32[512,256], index: 5, kind: input, shape index: {}]   ;;  %s3666_s6 = inlined_call_operand.<no memory space> [shape: f32[1], index: 6, kind: input, shape index: {}]   ;;  %s3667_s7 = inlined_call_operand.hbm [shape: f32[8,32,256], index: 7, kind: output, shape index: {}]  }
   0x1   :  { %12 = sst [smem:[#allocation2]] %s3666_s6 }
   0x2   :  { %13 = vsyncpa [#allocation4], 0 }
   0x3   :  { %15 = vsyncpa [#allocation4 + $0x1], 0 }
   0x4   :  { %16 = vsyncpa [#allocation7], 0 }
   0x5   :  { %17 = vsyncpa [#allocation5], 0 }
   0x6   :  { %19 = vsyncpa [#allocation5 + $0x1], 0  ;;  %s2898_s26 = smov 0   ;;  %s2900_s27 = smov 0  }
   0x7   :  { %s2902_s28 = smov 0   ;;  %s2904_s29 = smov 0  }
   0x8 LB: > { %s2919_s6 = sadd.s32 4294967295, %s2843_s29   ;;  %s2448_s30 = sadd.s32 4294967294, %s2843_s29   ;;  %s2843_s29 = sphi %s2904_s29, %s3727_s29   ;;  %s2839_s28 = sphi %s2902_s28, %s3726_s28   ;;  %s2835_s27 = sphi %s2900_s27, %s3725_s27   ;;  %s2831_s26 = sphi %s2898_s26, %s3724_s26  }
   0x9   : > { %p45_p0 = scmp.ne.s32.totalorder %s2835_s27, %s2831_s26  ;;  %p3668_p1 = scmp.eq.s32.totalorder %s2919_s6, 0 }
   0xa   : > { %p201_p3 = scmp.eq.s32.totalorder %s2448_s30, 1  ;;  %p2449_p5 = scmp.ge.s32.totalorder %s2843_s29, 1 }
   0xb   : > { %p2928_p4 = por %p3668_p1, %p45_p0  ;;  %p208_p7 = scmp.lt.s32.totalorder %s2843_s29, 3 }
   0xc   : > { %p2933_p6 = por %p201_p3, %p45_p0  ;;  %s2845_s11 = smov [#allocation6]  }
   0xd   : > { %s3685_s8 = scalar_select %p2928_p4, 1, 0 }
   0xe   : > { %s3686_s9 = scalar_select %p2933_p6, 1, 0 }
   0xf   : > { %p2938_p8 = pnand %p2449_p5, %p208_p7  ;;  %s232_s12 = sshll.u32 %s2845_s11, 4  ;;  %s233_s12 = int_to_ptr.vmem [resolvable:$true] %s232_s12 }
  0x10   : > { %s2952_s14 = sadd.s32 1, %s2843_s29   ;;  %s32_s15 = sadd.s32 1, %s2839_s28 }
  0x11   : > { %s3687_s10 = scalar_select %p2938_p8, 1, 0 }
  0x12   : > { %p2621_p9 = pneg %p2938_p8  ;;  %s29_s16 = ssub.s32 %s2843_s29, %s2952_s14 }
  0x13   : > { %s2732_s17 = scalar_lea.vmem %s233_s12, 16384  ;;  %p2740_p5 = scmp.lt.s32.totalorder %s233_s12, %s233_s12 }
  0x14   : > { %p2947_p11 = pnand %p2621_p9, %p3668_p1  ;;  %p2733_p13 = scmp.ne.s32.totalorder %s233_s12, %s2732_s17 }
  0x15   : > { %p2741_p7 = scmp.lt.s32.totalorder %s2732_s17, %s2732_s17 }
  0x16   : > { %p2723_p12 = pneg %p2947_p11 }
  0x17   : > { %p2742_p10 = por %p2741_p7, %p2740_p5 }
  0x18   : > { %p2735_p0 = pnand %p2733_p13, %p2723_p12 }
  0x1a   : > { %p2736_p3 = pneg %p2735_p0 }
  0x1c   : > { %p2743_p2 = pnand %p2742_p10, %p2736_p3 }
  0x1e   : > { %2746 = shalt.err (!%p2743_p2)
}
  0x1f   : > { %s3669_s18 = smov 256   ;;  %s3670_s19 = smov 16  }
  0x20   : > { %2624 = dma.hbm_to_vmem [thread:$0]  (!%p2947_p11), %s3665_s5, 16384, %s233_s12, [#allocation7], %s3669_s18, %s3669_s18, %s3670_s19  }
  0x21   : > { %p30_p2 = scmp.eq.s32.totalorder %s29_s16, 0  ;;  %p39_p9 = scmp.ne.s32.totalorder %s2839_s28, %s2835_s27 }
  0x22   : > { %p40_p10 = scmp.eq.s32.totalorder %s2843_s29, 0  ;;  %p2634_p12 = scmp.lt.s32.totalorder %s2843_s29, 2 }
  0x23   : > { %s2972_s22 = scalar_select %p30_p2, %s2839_s28, %s32_s15  }
  0x24   : > { %p41_p13 = por %p40_p10, %p39_p9  ;;  %p3689_p0 = scmp.eq.s32.totalorder %s2919_s6, 1 }
  0x25   : > { %s249_s24 = sand.u32 1, %s2839_s28   ;;  %s2472_s25 = sshll.u32 %s2843_s29, 12 }
  0x26   : > { %p2976_p3 = por %p3689_p0, %p39_p9  ;;  %s2452_s30 = sshll.u32 %s249_s24, 8 }
  0x27   : > { %s2985_s17 = scalar_lea.hbm %s3660_s0, %s2472_s25  ;;  %s253_s12 = scalar_lea.vmem [#allocation3], %s2452_s30 }
  0x28   : > { %s3690_s23 = scalar_select %p2976_p3, 1, 0 }
  0x29   : > { %s261_s15 = sshll.u32 %s253_s12, 4  ;;  %p2987_p11 = pnand %p2634_p12, %p41_p13  ;;  %s2991_s15 = int_to_ptr.vmem [resolvable:$true] %s261_s15 }
  0x2a   : > { %s2993_s20 = scalar_lea.sflag [#allocation4], %s249_s24  ;;  %s2747_s21 = scalar_lea.hbm %s2985_s17, 4096 }
  0x2b   : > { %p2748_p5 = scmp.ne.s32.totalorder %s2985_s17, %s2747_s21  ;;  %p2749_p7 = pneg %p2987_p11 }
  0x2c   : > { %s2752_s30 = scalar_lea.hbm %s3660_s0, 8192  ;;  %p2753_p10 = scmp.lt.s32.totalorder %s2985_s17, %s3660_s0 }
  0x2d   : > { %p2750_p2 = pnand %p2749_p7, %p2748_p5  ;;  %p2754_p12 = scmp.lt.s32.totalorder %s2752_s30, %s2747_s21 }
  0x2f   : > { %p2751_p9 = pneg %p2750_p2  ;;  %p2755_p13 = por %p2754_p12, %p2753_p10 }
  0x31   : > { %p2756_p0 = pnand %p2755_p13, %p2751_p9 }
  0x33   : > { %2759 = shalt.err (!%p2756_p0)
}
  0x34   : > { %s2760_s24 = scalar_lea.vmem %s2991_s15, 4096  ;;  %s2848_s18 = smov [#allocation3]  }
  0x35   : > { %p2761_p1 = scmp.ne.s32.totalorder %s2991_s15, %s2760_s24  ;;  %s2765_s19 = sshll.u32 %s2848_s18, 4  ;;  %s2766_s19 = int_to_ptr.vmem [resolvable:$false] %s2765_s19 }
  0x36   : > { %s2767_s25 = scalar_lea.vmem %s2766_s19, 8192  ;;  %p2768_p2 = scmp.lt.s32.totalorder %s2991_s15, %s2766_s19 }
  0x37   : > { %p2763_p6 = pnand %p2761_p1, %p2749_p7  ;;  %p2769_p3 = scmp.lt.s32.totalorder %s2767_s25, %s2760_s24 }
  0x39   : > { %p2764_p5 = pneg %p2763_p6  ;;  %p2770_p4 = por %p2769_p3, %p2768_p2 }
  0x3b   : > { %p2771_p8 = pnand %p2770_p4, %p2764_p5 }
  0x3d   : > { %2774 = shalt.err (!%p2771_p8)
}
  0x3e   : > { %s3692_s21 = smov 16   ;;  %s3693_s11 = smov 256  }
  0x3f   : > { %2628 = dma.hbm_to_vmem [thread:$0]  (!%p2987_p11), %s2985_s17, 4096, %s2991_s15, %s2993_s20, %s3693_s11, %s3693_s11, %s3692_s21  }
  0x40   : > { %p3694_p1 = scmp.ne.s32.totalorder %s3687_s10, 0 }
  0x42   : > { %273 = sbr.rel (%p3694_p1) target bundleno = 1218 (0x4c2), region = 48 }
  0x47   : > { %s3020_s18 = sand.u32 1, %s2835_s27   ;;  %p3695_p4 = scmp.ne.s32.totalorder %s3685_s8, 0 }
  0x48   : > { %s2457_s19 = sshll.u32 %s3020_s18, 8  ;;  %s276_s30 = scalar_lea.sflag [#allocation4], %s3020_s18 }
  0x49   : > { %s3026_s16 = scalar_lea.vmem [#allocation3], %s2457_s19 }
  0x4a   : > { %2818 = dma.done.wait (%p3695_p4), %s276_s30, 4096  }
  0x4b   : > { %2820 = vsyncadd (%p3695_p4), %s276_s30, 4294963200  ;;  %p3696_p6 = scmp.eq.s32.totalorder %s2919_s6, 0 }
  0x4d   : > { %2822 = dma.done.wait (%p3696_p6), [#allocation7], 16384   ;;  %p3697_p8 = pmov %p3696_p6 }
  0x4e   : > { %v324_v0 = vld [vmem:[%s3026_s16 + $0x40] sm:$0xff]  ;;  %v325_v1 = vld [vmem:[%s3026_s16 + $0x48] sm:$0xff]  ;;  %v326_v5 = vld [vmem:[%s3026_s16 + $0x50] sm:$0xff]  ;;  %vm2850_vm0 = vmmov 0   ;;  %vm488_vm1 = vcmask 130112   ;;  %vm495_vm2 = vcmask 195712  }
  0x4f   : > { %2824 = vsyncadd (%p3697_p8), [#allocation7], 4294950912  ;;  %v316_v2 = vld [vmem:[%s3026_s16] sm:$0xff]  ;;  %v360_v3 = vadd.f32 %v325_v1, %v324_v0  ;;  %v317_v4 = vld [vmem:[%s3026_s16 + $0x8] sm:$0xff]  ;;  %v425_v40 = vmax.f32 %v324_v0, %v325_v1  ;;  %vm502_vm3 = vcmask 261312   ;;  %vm561_vm4 = vcmask 1041409  }
  0x50   : > { %v327_v6 = vld [vmem:[%s3026_s16 + $0x58] sm:$0xff]  ;;  %v348_v7 = vadd.f32 %v317_v4, %v316_v2  ;;  %v318_v8 = vld [vmem:[%s3026_s16 + $0x10] sm:$0xff]  ;;  %v328_v12 = vld [vmem:[%s3026_s16 + $0x60] sm:$0xff]  ;;  %v413_v38 = vmax.f32 %v316_v2, %v317_v4  ;;  %vm660_vm5 = vcmask 1045509   ;;  %vm563_vm6 = vcmask 1042434   ;;  %s3553_s17 = scalar_lea.vmem [#allocation8], %s2457_s19 }
  0x51   : > { %v319_v9 = vld [vmem:[%s3026_s16 + $0x18] sm:$0xff]  ;;  %361 = vadd.xlane.f32.xlu1 %v360_v3  ;;  %v363_v10 = vadd.f32 %v327_v6, %v326_v5  ;;  %v329_v13 = vld [vmem:[%s3026_s16 + $0x68] sm:$0xff]  ;;  %v320_v14 = vld [vmem:[%s3026_s16 + $0x20] sm:$0xff]  ;;  %v428_v45 = vmax.f32 %v326_v5, %v327_v6  ;;  %vm662_vm7 = vcmask 1046534   ;;  %vm565_vm8 = vcmask 1043459   ;;  %s2474_s19 = sshll.u32 %s2919_s6, 12 }
  0x52   : > { %349 = vadd.xlane.f32.xlu0 %v348_v7  ;;  %v351_v11 = vadd.f32 %v319_v9, %v318_v8  ;;  %v321_v15 = vld [vmem:[%s3026_s16 + $0x28] sm:$0xff]  ;;  %v366_v16 = vadd.f32 %v329_v13, %v328_v12  ;;  %v334_v18 = vld [vmem:[%s3026_s16 + $0x90] sm:$0xff]  ;;  %v335_v19 = vld [vmem:[%s3026_s16 + $0x98] sm:$0xff]  ;;  %v416_v41 = vmax.f32 %v318_v8, %v319_v9  ;;  %v431_v51 = vmax.f32 %v328_v12, %v329_v13  ;;  %s2365_s15 = sshll.u32 %s3553_s17, 4  ;;  %s3601_s13 = scalar_lea.hbm %s3667_s7, %s2474_s19  ;;  %s3603_s15 = int_to_ptr.vmem [resolvable:$true] %s2365_s15 }
  0x53   : > { %v354_v17 = vadd.f32 %v321_v15, %v320_v14  ;;  %v332_v20 = vld [vmem:[%s3026_s16 + $0x80] sm:$0xff]  ;;  %v333_v21 = vld [vmem:[%s3026_s16 + $0x88] sm:$0xff]  ;;  %v375_v22 = vadd.f32 %v335_v19, %v334_v18  ;;  %v330_v24 = vld [vmem:[%s3026_s16 + $0x70] sm:$0xff]  ;;  %v419_v48 = vmax.f32 %v320_v14, %v321_v15  ;;  %v440_v55 = vmax.f32 %v334_v18, %v335_v19  ;;  %s2351_s12 = scalar_lea.sflag [#allocation5], %s3020_s18  ;;  %s2775_s24 = scalar_lea.vmem %s3603_s15, 4096 }
  0x54   : > { %v372_v23 = vadd.f32 %v333_v21, %v332_v20  ;;  %v331_v25 = vld [vmem:[%s3026_s16 + $0x78] sm:$0xff]  ;;  %v322_v26 = vld [vmem:[%s3026_s16 + $0x30] sm:$0xff]  ;;  %v340_v30 = vld [vmem:[%s3026_s16 + $0xc0] sm:$0xff]  ;;  %v437_v50 = vmax.f32 %v332_v20, %v333_v21  ;;  %vm664_vm9 = vcmask 1047559   ;;  %vm667_vm10 = vcmask 1043456   ;;  %p2776_p3 = scmp.ne.s32.totalorder %s3603_s15, %s2775_s24  ;;  %p3721_p11 = scmp.ne.s32.totalorder %s3690_s23, 0 }
  0x55   : > { %364 = vadd.xlane.f32.xlu1 %v363_v10  ;;  %v323_v27 = vld [vmem:[%s3026_s16 + $0x38] sm:$0xff]  ;;  %v369_v28 = vadd.f32 %v331_v25, %v330_v24  ;;  %v341_v31 = vld [vmem:[%s3026_s16 + $0xc8] sm:$0xff]  ;;  %v336_v32 = vld [vmem:[%s3026_s16 + $0xa0] sm:$0xff]  ;;  %v434_v56 = vmax.f32 %v330_v24, %v331_v25  ;;  %vm680_vm11 = vcmask 261120   ;;  %vm1182_vm12 = vcmask 1041408   ;;  %s2852_s25 = smov [#allocation8]  }
  0x56   : > { %352 = vadd.xlane.f32.xlu0 %v351_v11  ;;  %v357_v29 = vadd.f32 %v323_v27, %v322_v26  ;;  %v337_v33 = vld [vmem:[%s3026_s16 + $0xa8] sm:$0xff]  ;;  %v384_v34 = vadd.f32 %v341_v31, %v340_v30  ;;  %v342_v36 = vld [vmem:[%s3026_s16 + $0xd0] sm:$0xff]  ;;  %v343_v37 = vld [vmem:[%s3026_s16 + $0xd8] sm:$0xff]  ;;  %v422_v57 = vmax.f32 %v322_v26, %v323_v27  ;;  %v449_v58 = vmax.f32 %v340_v30, %v341_v31  ;;  %p2777_p7 = pnand %p2776_p3, %p3721_p11  ;;  %s2779_s21 = sshll.u32 %s2852_s25, 4  ;;  %s2780_s21 = int_to_ptr.vmem [resolvable:$false] %s2779_s21 }
  0x57   : > { %v378_v35 = vadd.f32 %v337_v33, %v336_v32  ;;  %v387_v39 = vadd.f32 %v343_v37, %v342_v36  ;;  %v338_v42 = vld [vmem:[%s3026_s16 + $0xb0] sm:$0xff]  ;;  %v339_v43 = vld [vmem:[%s3026_s16 + $0xb8] sm:$0xff]  ;;  %v344_v46 = vld [vmem:[%s3026_s16 + $0xe0] sm:$0xff]  ;;  %v443_v59 = vmax.f32 %v336_v32, %v337_v33  ;;  %v452_v61 = vmax.f32 %v342_v36, %v343_v37  ;;  %s2781_s11 = scalar_lea.vmem %s2780_s21, 8192  ;;  %p2782_p10 = scmp.lt.s32.totalorder %s3603_s15, %s2780_s21 }
  0x58   : > { %v381_v44 = vadd.f32 %v339_v43, %v338_v42  ;;  %v345_v47 = vld [vmem:[%s3026_s16 + $0xe8] sm:$0xff]  ;;  %v346_v52 = vld [vmem:[%s3026_s16 + $0xf0] sm:$0xff]  ;;  %v347_v53 = vld [vmem:[%s3026_s16 + $0xf8] sm:$0xff]  ;;  %v446_v60 = vmax.f32 %v338_v42, %v339_v43  ;;  %vm1178_vm13 = vcmask 15360   ;;  %p2778_p9 = pneg %p2777_p7  ;;  %p2783_p12 = scmp.lt.s32.totalorder %s2781_s11, %s2775_s24 }
  0x59   : > { %367 = vadd.xlane.f32.xlu1 %v366_v16  ;;  %v390_v49 = vadd.f32 %v345_v47, %v344_v46  ;;  %v393_v54 = vadd.f32 %v347_v53, %v346_v52  ;;  %v458_v62 = vmax.f32 %v346_v52, %v347_v53  ;;  %v455_v63 = vmax.f32 %v344_v46, %v345_v47  ;;  %v672_v0 = vld [vmem:[%s3661_s1 + $0x18] sm:$0xff]  ;;  %v671_v2 = vld [vmem:[%s3661_s1 + $0x10] sm:$0xff]  ;;  %v670_v5 = vld [vmem:[%s3661_s1 + $0x8] sm:$0xff] }
  0x5a   : > { %355 = vadd.xlane.f32.xlu0 %v354_v17  ;;  %v3071_v1 = vand.u32 4294901760, %v672_v0  ;;  %v3079_v4 = vand.u32 4294901760, %v671_v2  ;;  %v3088_v8 = vand.u32 4294901760, %v670_v5  ;;  %v669_v9 = vld [vmem:[%s3661_s1] sm:$0xff]  ;;  %v2849_v17 = vmov 0.0   ;;  %p2784_p13 = por %p2783_p12, %p2782_p10 }
  0x5b   : > { %v3100_v13 = vand.u32 4294901760, %v669_v9  ;;  %2528 = vmatprep.subr.mxu1 %v2849_v17  ;;  %2517 = vmatprep.subr.mxu0 %v2849_v17 }
  0x5c   : > { %v3077_v3 = vsub.f32 %v672_v0, %v3071_v1  ;;  %v3086_v7 = vsub.f32 %v671_v2, %v3079_v4  ;;  %v3098_v12 = vsub.f32 %v670_v5, %v3088_v8  ;;  %2518 = vmatpush3.msra.mxu0 %v3071_v1  ;;  %2536 = vmatprep.mubr.msk.f32.mxu1 %vm2850_vm0, %v2849_v17  ;;  %p2785_p0 = pnand %p2784_p13, %p2778_p9 }
  0x5d   : > { %376 = vadd.xlane.f32.xlu1 %v375_v22  ;;  %v3108_v18 = vsub.f32 %v669_v9, %v3100_v13  ;;  %2519 = vmatprep.subr.mxu0 %v2849_v17 }
  0x5e   : > { %373 = vadd.xlane.f32.xlu0 %v372_v23  ;;  %v790_v6 = vand.u32 4294901760, %v3077_v3  ;;  %v797_v11 = vand.u32 4294901760, %v3086_v7  ;;  %v804_v16 = vand.u32 4294901760, %v3098_v12  ;;  %2520 = vmatpush3.msra.mxu0 %v3079_v4 }
  0x5f   : > { %v811_v21 = vand.u32 4294901760, %v3108_v18  ;;  %2521 = vmatprep.subr.mxu0 %v2849_v17  ;;  %2525 = vmatprep.mubr.msk.f32.mxu0 %vm2850_vm0, %v2849_v17 }
  0x60   : > { %v791_v10 = vsub.f32 %v3077_v3, %v790_v6  ;;  %v798_v15 = vsub.f32 %v3086_v7, %v797_v11  ;;  %v805_v20 = vsub.f32 %v3098_v12, %v804_v16  ;;  %2522 = vmatpush3.msra.mxu0 %v3088_v8 }
  0x61   : > { %370 = vadd.xlane.f32.xlu1 %v369_v28  ;;  %v812_v23 = vsub.f32 %v3108_v18, %v811_v21  ;;  %2523 = vmatprep.subr.mxu0 %v2849_v17 }
  0x62   : > { %358 = vadd.xlane.f32.xlu0 %v357_v29  ;;  %v792_v14 = vand.u32 4294901760, %v791_v10  ;;  %v799_v19 = vand.u32 4294901760, %v798_v15  ;;  %v806_v22 = vand.u32 4294901760, %v805_v20  ;;  %2524 = vmatpush3.msra.mxu0 %v3100_v13 }
  0x63   : > { %v813_v24 = vand.u32 4294901760, %v812_v23  ;;  %2539 = vmatprep.subr.mxu0 %v2849_v17 }
  0x64   : > { %2529 = vmatpush3.msra.mxu1 %v792_v14 }
  0x65   : > { %385 = vadd.xlane.f32.xlu1 %v384_v34  ;;  %2530 = vmatprep.subr.mxu1 %v2849_v17 }
  0x66   : > { %379 = vadd.xlane.f32.xlu0 %v378_v35  ;;  %2531 = vmatpush3.msra.mxu1 %v799_v19 }
  0x67   : > { %2532 = vmatprep.subr.mxu1 %v2849_v17 }
  0x68   : > { %2533 = vmatpush3.msra.mxu1 %v806_v22 }
  0x69   : > { %414 = vmax.xlane.f32.xlu1 %v413_v38  ;;  %2534 = vmatprep.subr.mxu1 %v2849_v17 }
  0x6a   : > { %388 = vadd.xlane.f32.xlu0 %v387_v39  ;;  %2535 = vmatpush3.msra.mxu1 %v813_v24 }
  0x6b   : > { %2550 = vmatprep.subr.mxu1 %v2849_v17 }
  0x6d   : > { %426 = vmax.xlane.f32.xlu1 %v425_v40 }
  0x6e   : > { %417 = vmax.xlane.f32.xlu0 %v416_v41  ;;  %v477_v41 = vlaneseq }
  0x70   : > { %v3144_v47 = vshrl.u32 %v477_v41, 7 }
  0x71   : > { %382 = vadd.xlane.f32.xlu1 %v381_v44  ;;  %v478_v44 = vand.u32 127, %v477_v41 }
  0x72   : > { %429 = vmax.xlane.f32.xlu0 %v428_v45 }
  0x73   : > { %v3151_v53 = vsub.s32 %v478_v44, %v3144_v47 }
  0x75   : > { %420 = vmax.xlane.f32.xlu1 %v419_v48  ;;  %v483_v48 = vadd.s32 4294967288, %v478_v44 }
  0x76   : > { %391 = vadd.xlane.f32.xlu0 %v390_v49  ;;  %v490_v49 = vadd.s32 4294967280, %v478_v44 }
  0x79   : > { %438 = vmax.xlane.f32.xlu1 %v437_v50 }
  0x7a   : > { %432 = vmax.xlane.f32.xlu0 %v431_v51  ;;  %v497_v51 = vadd.s32 4294967272, %v478_v44 }
  0x7c   : > { %v3160_v2 = vsub.s32 %v497_v51, %v3144_v47 }
  0x7d   : > { %394 = vadd.xlane.f32.xlu1 %v393_v54  ;;  %v3154_v54 = vsub.s32 %v483_v48, %v3144_v47 }
  0x7e   : > { %441 = vmax.xlane.f32.xlu0 %v440_v55 }
  0x81   : > { %435 = vmax.xlane.f32.xlu1 %v434_v56 }
  0x82   : > { %423 = vmax.xlane.f32.xlu0 %v422_v57 }
  0x85   : > { %450 = vmax.xlane.f32.xlu1 %v449_v58  ;;  %v3157_v58 = vsub.s32 %v490_v49, %v3144_v47 }
  0x86   : > { %444 = vmax.xlane.f32.xlu0 %v443_v59 }
  0x89   : > { %447 = vmax.xlane.f32.xlu1 %v446_v60 }
  0x8a   : > { %453 = vmax.xlane.f32.xlu0 %v452_v61 }
  0x8d   : > { %459 = vmax.xlane.f32.xlu1 %v458_v62 }
  0x8e   : > { %456 = vmax.xlane.f32.xlu0 %v455_v63 }
  0xda   : > { %v362_v25 = vpop.xlane.xlu1 %361 }
  0xdb   : > { %v350_v26 = vpop.xlane.xlu0 %349  ;;  %v401_v55 = vmul.f32 0.00390625, %v362_v25 }
  0xdc   : > { %v397_v0 = vmul.f32 0.00390625, %v350_v26 }
  0xdd   : > { %v507_v14 = vrot.slane %v401_v55, %v3151_v53 }
  0xde   : > { %v365_v27 = vpop.xlane.xlu1 %364  ;;  %v482_v26 = vrot.slane %v397_v0, %v3151_v53 }
  0xdf   : > { %v353_v28 = vpop.xlane.xlu0 %352  ;;  %v402_v56 = vmul.f32 0.00390625, %v365_v27 }
  0xe0   : > { %v398_v57 = vmul.f32 0.00390625, %v353_v28 }
  0xe1   : > { %v511_v15 = vrot.slane %v402_v56, %v3154_v54 }
  0xe2   : > { %v368_v29 = vpop.xlane.xlu1 %367  ;;  %v487_v19 = vrot.slane %v398_v57, %v3154_v54 }
  0xe3   : > { %v356_v30 = vpop.xlane.xlu0 %355  ;;  %v403_v59 = vmul.f32 0.00390625, %v368_v29 }
  0xe4   : > { %v399_v60 = vmul.f32 0.00390625, %v356_v30 }
  0xe5   : > { %v516_v20 = vrot.slane %v403_v59, %v3157_v58 }
  0xe6   : > { %v377_v31 = vpop.xlane.xlu1 %376  ;;  %v494_v22 = vrot.slane %v399_v60, %v3157_v58 }
  0xe7   : > { %v374_v32 = vpop.xlane.xlu0 %373  ;;  %v406_v61 = vmul.f32 0.00390625, %v377_v31 }
  0xe8   : > { %v405_v62 = vmul.f32 0.00390625, %v374_v32  ;;  %v512_v32 = vsel %vm488_vm1, %v511_v15, %v507_v14 }
  0xe9   : > { %v530_v23 = vrot.slane %v406_v61, %v3154_v54  ;;  %v517_v41 = vsel %vm495_vm2, %v516_v20, %v512_v32 }
  0xea   : > { %v371_v33 = vpop.xlane.xlu1 %370  ;;  %v526_v24 = vrot.slane %v405_v62, %v3151_v53 }
  0xeb   : > { %v359_v34 = vpop.xlane.xlu0 %358  ;;  %v404_v5 = vmul.f32 0.00390625, %v371_v33  ;;  %v489_v33 = vsel %vm488_vm1, %v487_v19, %v482_v26 }
  0xec   : > { %v400_v9 = vmul.f32 0.00390625, %v359_v34  ;;  %v496_v44 = vsel %vm495_vm2, %v494_v22, %v489_v33  ;;  %v531_v48 = vsel %vm488_vm1, %v530_v23, %v526_v24 }
  0xed   : > { %v521_v27 = vrot.slane %v404_v5, %v3160_v2 }
  0xee   : > { %v386_v35 = vpop.xlane.xlu1 %385  ;;  %v501_v28 = vrot.slane %v400_v9, %v3160_v2 }
  0xef   : > { %v380_v36 = vpop.xlane.xlu0 %379  ;;  %v409_v31 = vmul.f32 0.00390625, %v386_v35  ;;  %v522_v51 = vsel %vm502_vm3, %v521_v27, %v517_v41 }
  0xf0   : > { %v407_v29 = vmul.f32 0.00390625, %v380_v36  ;;  %v503_v36 = vsel %vm502_vm3, %v501_v28, %v496_v44 }
  0xf1   : > { %v545_v57 = vrot.slane %v409_v31, %v3151_v53 }
  0xf2   : > { %v3134_v37 = vpop.xlane.xlu1 %414  ;;  %v535_v55 = vrot.slane %v407_v29, %v3157_v58 }
  0xf3   : > { %v389_v38 = vpop.xlane.xlu0 %388 }
  0xf4   : > { %v410_v34 = vmul.f32 0.00390625, %v389_v38  ;;  %v587_v38 = vrot.slane %v3134_v37, %v3151_v53  ;;  %v536_v14 = vsel %vm495_vm2, %v535_v55, %v531_v48 }
  0xf6   : > { %v3136_v39 = vpop.xlane.xlu1 %426  ;;  %v549_v61 = vrot.slane %v410_v34, %v3154_v54 }
  0xf7   : > { %v3138_v40 = vpop.xlane.xlu0 %417  ;;  %v606_v5 = vrot.slane %v3136_v39, %v3151_v53 }
  0xf8   : > { %v591_v62 = vrot.slane %v3138_v40, %v3154_v54 }
  0xfa   : > { %v383_v42 = vpop.xlane.xlu1 %382  ;;  %v592_v20 = vsel %vm488_vm1, %v591_v62, %v587_v38 }
  0xfb   : > { %v3140_v43 = vpop.xlane.xlu0 %429  ;;  %v408_v35 = vmul.f32 0.00390625, %v383_v42 }
  0xfc   : > { %v610_v59 = vrot.slane %v3140_v43, %v3154_v54 }
  0xfd   : > { %v540_v40 = vrot.slane %v408_v35, %v3160_v2 }
  0xfe   : > { %v3142_v45 = vpop.xlane.xlu1 %420  ;;  %v611_v39 = vsel %vm488_vm1, %v610_v59, %v606_v5  ;;  %v2460_v5 = vld [vmem:[%s3662_s2] ss:$0 sm:$0xff] }
  0xff   : > { %v392_v46 = vpop.xlane.xlu0 %391  ;;  %v596_v37 = vrot.slane %v3142_v45, %v3157_v58 }
 0x100   : > { %v411_v60 = vmul.f32 0.00390625, %v392_v46 }
 0x101   : > { %v597_v26 = vsel %vm495_vm2, %v596_v37, %v592_v20 }
 0x102   : > { %v3146_v50 = vpop.xlane.xlu1 %438  ;;  %v554_v19 = vrot.slane %v411_v60, %v3157_v58 }
 0x103   : > { %v3148_v52 = vpop.xlane.xlu0 %432  ;;  %v625_v45 = vrot.slane %v3146_v50, %v3151_v53 }
 0x104   : > { %v615_v42 = vrot.slane %v3148_v52, %v3157_v58 }
 0x106   : > { %v395_v63 = vpop.xlane.xlu1 %394  ;;  %v616_v22 = vsel %vm495_vm2, %v615_v42, %v611_v39 }
 0x107   : > { %v3162_v10 = vpop.xlane.xlu0 %441  ;;  %v412_v0 = vmul.f32 0.00390625, %v395_v63 }
 0x108   : > { %v629_v43 = vrot.slane %v3162_v10, %v3154_v54 }
 0x109   : > { %v559_v23 = vrot.slane %v412_v0, %v3160_v2 }
 0x10a   : > { %v436_v25 = vpop.xlane.xlu1 %435  ;;  %v630_v27 = vsel %vm488_vm1, %v629_v43, %v625_v45 }
 0x10b   : > { %v424_v30 = vpop.xlane.xlu0 %423  ;;  %v620_v46 = vrot.slane %v436_v25, %v3160_v2  ;;  %v550_v25 = vsel %vm488_vm1, %v549_v61, %v545_v57 }
 0x10c   : > { %v601_v15 = vrot.slane %v424_v30, %v3160_v2  ;;  %v555_v34 = vsel %vm495_vm2, %v554_v19, %v550_v25 }
 0x10d   : > { %v621_v28 = vsel %vm502_vm3, %v620_v46, %v616_v22  ;;  %v560_v48 = vsel %vm502_vm3, %v559_v23, %v555_v34  ;;  %v2025_v34 = vld [vmem:[#allocation6 + $0x2d0] sm:$0xff] }
 0x10e   : > { %v451_v49 = vpop.xlane.xlu1 %450  ;;  %v602_v50 = vsel %vm502_vm3, %v601_v15, %v597_v26 }
 0x10f   : > { %v445_v56 = vpop.xlane.xlu0 %444  ;;  %v644_v30 = vrot.slane %v451_v49, %v3151_v53  ;;  %v562_v53 = vsel %vm561_vm4, %v522_v51, %v503_v36  ;;  %v661_v49 = vsel %vm660_vm5, %v621_v28, %v602_v50  ;;  %v2029_v28 = vld [vmem:[#allocation6 + $0x2f0] sm:$0xff]  ;;  %v2028_v50 = vld [vmem:[#allocation6 + $0x2e8] sm:$0xff] }
 0x110   : > { %v634_v52 = vrot.slane %v445_v56, %v3157_v58 }
 0x112   : > { %v448_v9 = vpop.xlane.xlu1 %447  ;;  %v635_v31 = vsel %vm495_vm2, %v634_v52, %v630_v27  ;;  %v2030_v27 = vld [vmem:[#allocation6 + $0x2f8] sm:$0xff] }
 0x113   : > { %v454_v63 = vpop.xlane.xlu0 %453  ;;  %v639_v10 = vrot.slane %v448_v9, %v3160_v2 }
 0x114   : > { %v648_v24 = vrot.slane %v454_v63, %v3154_v54  ;;  %v541_v54 = vsel %vm502_vm3, %v540_v40, %v536_v14 }
 0x115   : > { %v640_v41 = vsel %vm502_vm3, %v639_v10, %v635_v31  ;;  %v564_v35 = vsel %vm563_vm6, %v541_v54, %v562_v53  ;;  %v2027_v31 = vld [vmem:[#allocation6 + $0x2e0] sm:$0xff] }
 0x116   : > { %v460_v29 = vpop.xlane.xlu1 %459  ;;  %v649_v55 = vsel %vm488_vm1, %v648_v24, %v644_v30  ;;  %v663_v56 = vsel %vm662_vm7, %v640_v41, %v661_v49  ;;  %v1965_v30 = vld [vmem:[#allocation6 + $0xf0] sm:$0xff]  ;;  %v1963_v54 = vld [vmem:[#allocation6 + $0xe0] sm:$0xff]  ;;  %v1962_v41 = vld [vmem:[#allocation6 + $0xd8] sm:$0xff] }
 0x117   : > { %v457_v32 = vpop.xlane.xlu0 %456  ;;  %v658_v33 = vrot.slane %v460_v29, %v3160_v2  ;;  %v1966_v29 = vld [vmem:[#allocation6 + $0xf8] sm:$0xff]  ;;  %v1959_v53 = vld [vmem:[#allocation6 + $0xc0] sm:$0xff] }
 0x118   : > { %v653_v44 = vrot.slane %v457_v32, %v3157_v58  ;;  %v566_v58 = vsel %vm565_vm8, %v560_v48, %v564_v35  ;;  %v1964_v32 = vld [vmem:[#allocation6 + $0xe8] sm:$0xff]  ;;  %v2022_v49 = vld [vmem:[#allocation6 + $0x2b8] sm:$0xff]  ;;  %v2021_v35 = vld [vmem:[#allocation6 + $0x2b0] sm:$0xff] }
 0x119   : > { %v1960_v48 = vld [vmem:[#allocation6 + $0xc8] sm:$0xff] }
 0x11a   : > { %v654_v2 = vsel %vm495_vm2, %v653_v44, %v649_v55  ;;  %v1961_v44 = vld [vmem:[#allocation6 + $0xd0] sm:$0xff]  ;;  %v2023_v55 = vld [vmem:[#allocation6 + $0x2c0] sm:$0xff] }
 0x11b   : > { %v659_v57 = vsel %vm502_vm3, %v658_v33, %v654_v2  ;;  %v2026_v33 = vld [vmem:[#allocation6 + $0x2d8] sm:$0xff] }
 0x11c   : > { %v665_v38 = vsel %vm664_vm9, %v659_v57, %v663_v56  ;;  %v1958_v2 = vld [vmem:[#allocation6 + $0xb8] sm:$0xff]  ;;  %v1957_v56 = vld [vmem:[#allocation6 + $0xb0] sm:$0xff]  ;;  %v2020_v57 = vld [vmem:[#allocation6 + $0x2a8] sm:$0xff] }
 0x11d   : > { %v668_v59 = vsel %vm667_vm10, %v566_v58, %v665_v38  ;;  %v1956_v58 = vld [vmem:[#allocation6 + $0xa8] sm:$0xff]  ;;  %v2019_v38 = vld [vmem:[#allocation6 + $0x2a0] sm:$0xff] }
 0x11e   : > { %v682_v60 = vsel %vm680_vm11, %v668_v59, 0  ;;  %v1955_v59 = vld [vmem:[#allocation6 + $0xa0] sm:$0xff] }
 0x11f   : > { %v753_v61 = vand.u32 4294901760, %v682_v60 }
 0x121   : > { %v754_v62 = vsub.f32 %v682_v60, %v753_v61  ;;  %2537 = vmatmul.mubr.f32.vlgmr.msra.gmra.mxu1 %v753_v61  ;;  %v2018_v60 = vld [vmem:[#allocation6 + $0x298] sm:$0xff] }
 0x122   : > { %2551 = vmatpush3.msra.mxu1 %v3071_v1  ;;  %2558 = vmatprep.mubr.msk.f32.mxu1 %vm2850_vm0, %v2849_v17 }
 0x123   : > { %2552 = vmatprep.subr.mxu1 %v2849_v17  ;;  %v755_v51 = vand.u32 4294901760, %v754_v62 }
 0x124   : > { %2553 = vmatpush3.msra.mxu1 %v3079_v4 }
 0x125   : > { %2554 = vmatprep.subr.mxu1 %v2849_v17  ;;  %v756_v36 = vsub.f32 %v754_v62, %v755_v51 }
 0x126   : > { %2555 = vmatpush3.msra.mxu1 %v3088_v8 }
 0x127   : > { %2556 = vmatprep.subr.mxu1 %v2849_v17  ;;  %v757_v42 = vand.u32 4294901760, %v756_v36 }
 0x128   : > { %2557 = vmatpush3.msra.mxu1 %v3100_v13 }
 0x129   : > { %2559 = vmatmul.mubr.f32.vlgmr.msra.gmra.mxu1 %v755_v51  ;;  %2572 = vmatprep.subr.mxu1 %v2849_v17 }
 0x12a   : > { %2526 = vmatmul.mubr.f32.vlgmr.msra.gmra.mxu0 %v757_v42  ;;  %2573 = vmatpush3.msra.mxu1 %v3071_v1  ;;  %v1170_v1 = vld [vmem:[%s3663_s3] sm:$0x3] }
 0x12b   : > { %2540 = vmatpush3.msra.mxu0 %v3077_v3  ;;  %2574 = vmatprep.subr.mxu1 %v2849_v17  ;;  %v1184_v3 = vsel %vm1182_vm12, %v1170_v1, 0  ;;  %v2461_v1 = vld [vmem:[%s3664_s4] ss:$0 sm:$0xff] }
 0x12c   : > { %2541 = vmatprep.subr.mxu0 %v2849_v17  ;;  %2575 = vmatpush3.msra.mxu1 %v3079_v4  ;;  %v1217_v4 = vand.u32 4294901760, %v1184_v3 }
 0x12d   : > { %2542 = vmatpush3.msra.mxu0 %v3086_v7  ;;  %2576 = vmatprep.subr.mxu1 %v2849_v17 }
 0x12e   : > { %2543 = vmatprep.subr.mxu0 %v2849_v17  ;;  %2577 = vmatpush3.msra.mxu1 %v3088_v8 }
 0x12f   : > { %2544 = vmatpush3.msra.mxu0 %v3098_v12  ;;  %2578 = vmatprep.subr.mxu1 %v2849_v17 }
 0x130   : > { %2545 = vmatprep.subr.mxu0 %v2849_v17  ;;  %2547 = vmatprep.mubr.msk.f32.mxu0 %vm2850_vm0, %v2849_v17 }
 0x131   : > { %2546 = vmatpush3.msra.mxu0 %v3108_v18  ;;  %2579 = vmatpush3.msra.mxu1 %v3100_v13 }
 0x132   : > { %2580 = vmatprep.mubr.msk.f32.mxu1 %vm2850_vm0, %v2849_v17  ;;  %2548 = vmatmul.mubr.f32.vlgmr.msra.gmra.mxu0 %v754_v62 }
 0x133   : > { %2561 = vmatprep.subr.mxu0 %v2849_v17  ;;  %2581 = vmatmul.mubr.f32.vlgmr.msra.gmra.mxu1 %v753_v61 }
 0x134   : > { %2562 = vmatpush3.msra.mxu0 %v790_v6  ;;  %2569 = vmatprep.mubr.msk.f32.mxu0 %vm2850_vm0, %v2849_v17  ;;  %v1294_v6 = vsub.f32 %v1184_v3, %v1217_v4 }
 0x135   : > { %2563 = vmatprep.subr.mxu0 %v2849_v17  ;;  %2588 = vmatprep.subr.mxu1 %v2849_v17 }
 0x136   : > { %2564 = vmatpush3.msra.mxu0 %v797_v11  ;;  %2590 = vmatprep.mubr.msk.f32.mxu1 %vm2850_vm0, %v2849_v17  ;;  %v1295_v7 = vand.u32 4294901760, %v1294_v6 }
 0x137   : > { %2565 = vmatprep.subr.mxu0 %v2849_v17 }
 0x138   : > { %2566 = vmatpush3.msra.mxu0 %v804_v16  ;;  %v1296_v8 = vsub.f32 %v1294_v6, %v1295_v7 }
 0x139   : > { %2567 = vmatprep.subr.mxu0 %v2849_v17 }
 0x13a   : > { %2568 = vmatpush3.msra.mxu0 %v811_v21  ;;  %v1297_v11 = vand.u32 4294901760, %v1296_v8 }
 0x13b   : > { %2570 = vmatmul.mubr.f32.vlgmr.msra.gmra.mxu0 %v753_v61  ;;  %2583 = vmatprep.subr.mxu0 %v2849_v17  ;;  %v2017_v61 = vld [vmem:[#allocation6 + $0x290] sm:$0xff] }
 0x13c   : > { %2585 = vmatprep.mubr.msk.f32.mxu0 %vm2850_vm0, %v2849_v17  ;;  %2584 = vmatpush3.msra.mxu0 %v1217_v4 }
 0x13d   : > { %2593 = vmatprep.subr.mxu0 %v2849_v17  ;;  %2589 = vmatpush3.msra.mxu1 %v1297_v11 }
 0x13e   : > { %2598 = vmatprep.subr.mxu1 %v2849_v17 }
 0x1e1   : > { %v850_v12 = vpop.f32.mrf.mxu1 }
 0x1e3   : > { %v2538_v13 = vpop.f32.mrf.mxu1 }
 0x1e9   : > { %v1007_v16 = vpop.f32.mrf.mxu1 }
 0x1ea   : > { %v759_v18 = vpop.f32.mrf.mxu0 }
 0x1eb   : > { %v2560_v21 = vpop.f32.mrf.mxu1  ;;  %v760_v37 = vadd.f32 %v2460_v5, %v759_v18 }
 0x1ec   : > { %v2527_v0 = vpop.f32.mrf.mxu0 }
 0x1ed   : > { %v851_v9 = vadd.f32 %v850_v12, %v760_v37 }
 0x1f2   : > { %v930_v43 = vpop.f32.mrf.mxu0 }
 0x1f3   : > { %v1165_v46 = vpop.f32.mrf.mxu1  ;;  %v931_v15 = vadd.f32 %v930_v43, %v851_v9 }
 0x1f4   : > { %v2549_v14 = vpop.f32.mrf.mxu0 }
 0x1f5   : > { %v2582_v40 = vpop.f32.mrf.mxu1  ;;  %v1008_v52 = vadd.f32 %v1007_v16, %v931_v15  ;;  %v1954_v15 = vld [vmem:[#allocation6 + $0x98] sm:$0xff] }
 0x1fb   : > { %v1090_v63 = vpop.f32.mrf.mxu0 }
 0x1fc   : > { %v1091_v39 = vadd.f32 %v1090_v63, %v1008_v52  ;;  %v2016_v52 = vld [vmem:[#allocation6 + $0x288] sm:$0xff]  ;;  %v1953_v63 = vld [vmem:[#allocation6 + $0x90] sm:$0xff] }
 0x1fd   : > { %v2571_v19 = vpop.f32.mrf.mxu0 }
 0x1fe   : > { %v1166_v45 = vadd.f32 %v1165_v46, %v1091_v39  ;;  %v2015_v39 = vld [vmem:[#allocation6 + $0x280] sm:$0xff]  ;;  %v1952_v19 = vld [vmem:[#allocation6 + $0x88] sm:$0xff] }
 0x200   : > { %v1169_v10 = vmax.f32 %v1166_v45, 0.0  ;;  %v2014_v45 = vld [vmem:[#allocation6 + $0x278] sm:$0xff] }
 0x202   : > { %v1180_v20 = vsel %vm1178_vm13, %v1169_v10, 0  ;;  %v1951_v10 = vld [vmem:[#allocation6 + $0x80] sm:$0xff] }
 0x203   : > { %v1252_v22 = vand.u32 4294901760, %v1180_v20 }
 0x205   : > { %v1253_v23 = vsub.f32 %v1180_v20, %v1252_v22  ;;  %2591 = vmatmul.mubr.f32.vlgmr.msra.gmra.mxu1 %v1252_v22  ;;  %v2013_v20 = vld [vmem:[#allocation6 + $0x270] sm:$0xff] }
 0x206   : > { %2599 = vmatpush3.msra.mxu1 %v1217_v4  ;;  %2600 = vmatprep.mubr.msk.f32.mxu1 %vm2850_vm0, %v2849_v17 }
 0x207   : > { %v1254_v24 = vand.u32 4294901760, %v1253_v23  ;;  %2608 = vmatprep.subr.mxu1 %v2849_v17 }
 0x209   : > { %2601 = vmatmul.mubr.f32.vlgmr.msra.gmra.mxu1 %v1254_v24  ;;  %v1255_v25 = vsub.f32 %v1253_v23, %v1254_v24  ;;  %v1949_v24 = vld [vmem:[#allocation6 + $0x70] sm:$0xff] }
 0x20a   : > { %2609 = vmatpush3.msra.mxu1 %v1217_v4  ;;  %2610 = vmatprep.mubr.msk.f32.mxu1 %vm2850_vm0, %v2849_v17 }
 0x20b   : > { %v1256_v26 = vand.u32 4294901760, %v1255_v25  ;;  %2136 = vmatprep.subr.mxu1 %v2030_v27  ;;  %v2011_v25 = vld [vmem:[#allocation6 + $0x260] sm:$0xff]  ;;  %v2010_v27 = vld [vmem:[#allocation6 + $0x258] sm:$0xff] }
 0x20d   : > { %2586 = vmatmul.mubr.f32.vlgmr.msra.gmra.mxu0 %v1256_v26  ;;  %2611 = vmatmul.mubr.f32.vlgmr.msra.gmra.mxu1 %v1252_v22  ;;  %v1948_v26 = vld [vmem:[#allocation6 + $0x68] sm:$0xff] }
 0x20e   : > { %2594 = vmatpush3.msra.mxu0 %v1294_v6  ;;  %2595 = vmatprep.mubr.msk.f32.mxu0 %vm2850_vm0, %v2849_v17 }
 0x20f   : > { %2603 = vmatprep.subr.mxu0 %v2849_v17  ;;  %2137 = vmatpush1.msra.mxu1 %v2029_v28  ;;  %v1947_v28 = vld [vmem:[#allocation6 + $0x60] sm:$0xff] }
 0x210   : > { %2138 = vmatprep.subr.mxu1 %v2028_v50  ;;  %v3303_v50 = vsub.s32 0, %v3144_v47 }
 0x211   : > { %2596 = vmatmul.mubr.f32.vlgmr.msra.gmra.mxu0 %v1253_v23  ;;  %2139 = vmatpush1.msra.mxu1 %v2027_v31  ;;  %v2012_v23 = vld [vmem:[#allocation6 + $0x268] sm:$0xff] }
 0x212   : > { %2604 = vmatpush3.msra.mxu0 %v1295_v7  ;;  %2605 = vmatprep.mubr.msk.f32.mxu0 %vm2850_vm0, %v2849_v17  ;;  %v2024_v17 = vld [vmem:[#allocation6 + $0x2c8] sm:$0xff] }
 0x213   : > { %2065 = vmatprep.subr.mxu0 %v1966_v29  ;;  %2140 = vmatprep.subr.mxu1 %v2026_v33  ;;  %v2009_v29 = vld [vmem:[#allocation6 + $0x250] sm:$0xff]  ;;  %v2008_v31 = vld [vmem:[#allocation6 + $0x248] sm:$0xff]  ;;  %v2007_v33 = vld [vmem:[#allocation6 + $0x240] sm:$0xff] }
 0x214   : > { %2141 = vmatpush1.msra.mxu1 %v2025_v34  ;;  %v1944_v34 = vld [vmem:[#allocation6 + $0x48] sm:$0xff] }
 0x215   : > { %2606 = vmatmul.mubr.f32.vlgmr.msra.gmra.mxu0 %v1252_v22  ;;  %2142 = vmatprep.subr.mxu1 %v2024_v17  ;;  %v1950_v22 = vld [vmem:[#allocation6 + $0x78] sm:$0xff] }
 0x216   : > { %2066 = vmatpush1.msra.mxu0 %v1965_v30  ;;  %2143 = vmatpush1.msra.mxu1 %v2023_v55  ;;  %v1946_v30 = vld [vmem:[#allocation6 + $0x58] sm:$0xff]  ;;  %v1943_v55 = vld [vmem:[#allocation6 + $0x40] sm:$0xff] }
 0x217   : > { %2067 = vmatprep.subr.mxu0 %v1964_v32  ;;  %2144 = vmatprep.subr.mxu1 %v2022_v49  ;;  %v1945_v32 = vld [vmem:[#allocation6 + $0x50] sm:$0xff]  ;;  %v1942_v49 = vld [vmem:[#allocation6 + $0x38] sm:$0xff] }
 0x218   : > { %2068 = vmatpush1.msra.mxu0 %v1963_v54  ;;  %2145 = vmatpush1.msra.mxu1 %v2021_v35  ;;  %v1941_v35 = vld [vmem:[#allocation6 + $0x30] sm:$0xff] }
 0x219   : > { %2069 = vmatprep.subr.mxu0 %v1962_v41  ;;  %2146 = vmatprep.subr.mxu1 %v2020_v57  ;;  %v2006_v41 = vld [vmem:[#allocation6 + $0x238] sm:$0xff]  ;;  %v1940_v57 = vld [vmem:[#allocation6 + $0x28] sm:$0xff] }
 0x21a   : > { %2070 = vmatpush1.msra.mxu0 %v1961_v44  ;;  %2147 = vmatpush1.msra.mxu1 %v2019_v38  ;;  %v3309_v44 = vsub.s32 1, %v3144_v47 }
 0x21b   : > { %2071 = vmatprep.subr.mxu0 %v1960_v48  ;;  %2148 = vmatprep.subr.mxu1 %v2018_v60  ;;  %v1682_v48 = vsub.s32 2, %v3144_v47  ;;  %v1939_v60 = vld [vmem:[#allocation6 + $0x20] sm:$0xff] }
 0x21c   : > { %2072 = vmatpush1.msra.mxu0 %v1959_v53  ;;  %2149 = vmatpush1.msra.mxu1 %v2017_v61  ;;  %v2005_v53 = vld [vmem:[#allocation6 + $0x230] sm:$0xff] }
 0x21d   : > { %2073 = vmatprep.subr.mxu0 %v1958_v2  ;;  %2150 = vmatprep.subr.mxu1 %v2016_v52  ;;  %v2004_v2 = vld [vmem:[#allocation6 + $0x228] sm:$0xff]  ;;  %v2001_v61 = vld [vmem:[#allocation6 + $0x210] sm:$0xff] }
 0x21e   : > { %2074 = vmatpush1.msra.mxu0 %v1957_v56  ;;  %2151 = vmatpush1.msra.mxu1 %v2015_v39  ;;  %v2003_v56 = vld [vmem:[#allocation6 + $0x220] sm:$0xff]  ;;  %v2053_v52 = vld [vmem:[#allocation6 + $0x3b0] sm:$0xff]  ;;  %v2052_v39 = vld [vmem:[#allocation6 + $0x3a8] sm:$0xff] }
 0x21f   : > { %2075 = vmatprep.subr.mxu0 %v1956_v58  ;;  %2152 = vmatprep.subr.mxu1 %v2014_v45  ;;  %v2051_v45 = vld [vmem:[#allocation6 + $0x3a0] sm:$0xff] }
 0x220   : > { %2076 = vmatpush1.msra.mxu0 %v1955_v59  ;;  %2153 = vmatpush1.msra.mxu1 %v2013_v20  ;;  %v2002_v59 = vld [vmem:[#allocation6 + $0x218] sm:$0xff] }
 0x221   : > { %2077 = vmatprep.subr.mxu0 %v1954_v15  ;;  %2154 = vmatprep.subr.mxu1 %v2012_v23  ;;  %v1991_v15 = vld [vmem:[#allocation6 + $0x1c0] sm:$0xff]  ;;  %v2050_v20 = vld [vmem:[#allocation6 + $0x398] sm:$0xff]  ;;  %v2049_v23 = vld [vmem:[#allocation6 + $0x390] sm:$0xff] }
 0x222   : > { %2078 = vmatpush1.msra.mxu0 %v1953_v63  ;;  %2155 = vmatpush1.msra.mxu1 %v2011_v25  ;;  %v1990_v63 = vld [vmem:[#allocation6 + $0x1b8] sm:$0xff]  ;;  %v2048_v25 = vld [vmem:[#allocation6 + $0x388] sm:$0xff] }
 0x223   : > { %2079 = vmatprep.subr.mxu0 %v1952_v19  ;;  %2156 = vmatprep.subr.mxu1 %v2010_v27  ;;  %v1989_v19 = vld [vmem:[#allocation6 + $0x1b0] sm:$0xff]  ;;  %v2047_v27 = vld [vmem:[#allocation6 + $0x380] sm:$0xff] }
 0x224   : > { %2080 = vmatpush1.msra.mxu0 %v1951_v10  ;;  %2157 = vmatpush1.msra.mxu1 %v2009_v29  ;;  %v1988_v10 = vld [vmem:[#allocation6 + $0x1a8] sm:$0xff]  ;;  %v2046_v29 = vld [vmem:[#allocation6 + $0x378] sm:$0xff] }
 0x225   : > { %2081 = vmatprep.subr.mxu0 %v1950_v22  ;;  %2158 = vmatprep.subr.mxu1 %v2008_v31  ;;  %v1987_v22 = vld [vmem:[#allocation6 + $0x1a0] sm:$0xff]  ;;  %v2045_v31 = vld [vmem:[#allocation6 + $0x370] sm:$0xff] }
 0x226   : > { %2082 = vmatpush1.msra.mxu0 %v1949_v24  ;;  %2159 = vmatpush1.msra.mxu1 %v2007_v33  ;;  %v1986_v24 = vld [vmem:[#allocation6 + $0x198] sm:$0xff]  ;;  %v2044_v33 = vld [vmem:[#allocation6 + $0x368] sm:$0xff] }
 0x227   : > { %2083 = vmatprep.subr.mxu0 %v1948_v26  ;;  %2160 = vmatprep.subr.mxu1 %v2006_v41  ;;  %v1985_v26 = vld [vmem:[#allocation6 + $0x190] sm:$0xff]  ;;  %v1980_v41 = vld [vmem:[#allocation6 + $0x168] sm:$0xff] }
 0x228   : > { %2084 = vmatpush1.msra.mxu0 %v1947_v28  ;;  %2161 = vmatpush1.msra.mxu1 %v2005_v53  ;;  %v1984_v28 = vld [vmem:[#allocation6 + $0x188] sm:$0xff]  ;;  %v1978_v53 = vld [vmem:[#allocation6 + $0x158] sm:$0xff] }
 0x229   : > { %2085 = vmatprep.subr.mxu0 %v1946_v30  ;;  %2162 = vmatprep.subr.mxu1 %v2004_v2  ;;  %v1983_v30 = vld [vmem:[#allocation6 + $0x180] sm:$0xff]  ;;  %v1977_v2 = vld [vmem:[#allocation6 + $0x150] sm:$0xff] }
 0x22a   : > { %2086 = vmatpush1.msra.mxu0 %v1945_v32  ;;  %2163 = vmatpush1.msra.mxu1 %v2003_v56  ;;  %v1982_v32 = vld [vmem:[#allocation6 + $0x178] sm:$0xff]  ;;  %v1976_v56 = vld [vmem:[#allocation6 + $0x148] sm:$0xff] }
 0x22b   : > { %2087 = vmatprep.subr.mxu0 %v1944_v34  ;;  %2164 = vmatprep.subr.mxu1 %v2002_v59  ;;  %v2043_v34 = vld [vmem:[#allocation6 + $0x360] sm:$0xff]  ;;  %v1974_v59 = vld [vmem:[#allocation6 + $0x138] sm:$0xff] }
 0x22c   : > { %2088 = vmatpush1.msra.mxu0 %v1943_v55  ;;  %2165 = vmatpush1.msra.mxu1 %v2001_v61  ;;  %v2041_v55 = vld [vmem:[#allocation6 + $0x350] sm:$0xff] }
 0x22d   : > { %2089 = vmatprep.subr.mxu0 %v1942_v49  ;;  %v2040_v49 = vld [vmem:[#allocation6 + $0x348] sm:$0xff]  ;;  %v1973_v61 = vld [vmem:[#allocation6 + $0x130] sm:$0xff] }
 0x22e   : > { %2090 = vmatpush1.msra.mxu0 %v1941_v35  ;;  %v2039_v35 = vld [vmem:[#allocation6 + $0x340] sm:$0xff] }
 0x22f   : > { %2091 = vmatprep.subr.mxu0 %v1940_v57  ;;  %v2038_v57 = vld [vmem:[#allocation6 + $0x338] sm:$0xff] }
 0x230   : > { %2092 = vmatpush1.msra.mxu0 %v1939_v60  ;;  %v2036_v60 = vld [vmem:[#allocation6 + $0x328] sm:$0xff] }
 0x2c5   : > { %v1334_v62 = vpop.f32.mrf.mxu1 }
 0x2c7   : > { %v2592_v51 = vpop.f32.mrf.mxu1 }
 0x2c8   : > { %v2000_v51 = vld [vmem:[#allocation6 + $0x208] sm:$0xff] }
 0x2c9   : > { %v1482_v36 = vpop.f32.mrf.mxu1  ;;  %2166 = vmatprep.subr.mxu1 %v2000_v51  ;;  %v1972_v51 = vld [vmem:[#allocation6 + $0x128] sm:$0xff] }
 0x2cb   : > { %v2602_v42 = vpop.f32.mrf.mxu1 }
 0x2cc   : > { %v1701_v42 = vsub.s32 3, %v3144_v47 }
 0x2cd   : > { %v1258_v3 = vpop.f32.mrf.mxu0  ;;  %v1628_v4 = vpop.f32.mrf.mxu1 }
 0x2ce   : > { %v1259_v6 = vadd.f32 %v2461_v1, %v1258_v3  ;;  %v1999_v1 = vld [vmem:[#allocation6 + $0x200] sm:$0xff]  ;;  %v1936_v3 = vld [vmem:[#allocation6 + $0x8] sm:$0xff] }
 0x2cf   : > { %v2587_v7 = vpop.f32.mrf.mxu0  ;;  %v2612_v8 = vpop.f32.mrf.mxu1  ;;  %2167 = vmatpush1.msra.mxu1 %v1999_v1  ;;  %v2033_v1 = vld [vmem:[#allocation6 + $0x310] sm:$0xff] }
 0x2d0   : > { %v1335_v11 = vadd.f32 %v1334_v62, %v1259_v6  ;;  %v1938_v62 = vld [vmem:[#allocation6 + $0x18] sm:$0xff]  ;;  %v1935_v6 = vld [vmem:[#allocation6] sm:$0xff]  ;;  %v2061_v7 = vld [vmem:[#allocation6 + $0x3f0] sm:$0xff] }
 0x2d1   : > { %v1408_v12 = vpop.f32.mrf.mxu0  ;;  %2093 = vmatprep.subr.mxu0 %v1938_v62  ;;  %v1998_v8 = vld [vmem:[#allocation6 + $0x1f8] sm:$0xff]  ;;  %v2035_v62 = vld [vmem:[#allocation6 + $0x320] sm:$0xff] }
 0x2d2   : > { %v1409_v13 = vadd.f32 %v1408_v12, %v1335_v11  ;;  %v2060_v12 = vld [vmem:[#allocation6 + $0x3e8] sm:$0xff] }
 0x2d3   : > { %v2597_v16 = vpop.f32.mrf.mxu0 }
 0x2d4   : > { %v1483_v18 = vadd.f32 %v1482_v36, %v1409_v13  ;;  %v1937_v36 = vld [vmem:[#allocation6 + $0x10] sm:$0xff]  ;;  %v2059_v16 = vld [vmem:[#allocation6 + $0x3e0] sm:$0xff] }
 0x2d5   : > { %v1556_v21 = vpop.f32.mrf.mxu0  ;;  %2094 = vmatpush1.msra.mxu0 %v1937_v36  ;;  %v1997_v13 = vld [vmem:[#allocation6 + $0x1f0] sm:$0xff]  ;;  %v2034_v36 = vld [vmem:[#allocation6 + $0x318] sm:$0xff] }
 0x2d6   : > { %v1557_v0 = vadd.f32 %v1556_v21, %v1483_v18  ;;  %2095 = vmatprep.subr.mxu0 %v1936_v3  ;;  %v1996_v18 = vld [vmem:[#allocation6 + $0x1e8] sm:$0xff]  ;;  %v2058_v21 = vld [vmem:[#allocation6 + $0x3d8] sm:$0xff] }
 0x2d7   : > { %v2607_v5 = vpop.f32.mrf.mxu0  ;;  %2096 = vmatpush1.msra.mxu0 %v1935_v6  ;;  %v1970_v3 = vld [vmem:[#allocation6 + $0x118] sm:$0xff]  ;;  %v1969_v6 = vld [vmem:[#allocation6 + $0x110] sm:$0xff] }
 0x2d8   : > { %v1629_v37 = vadd.f32 %v1628_v4, %v1557_v0  ;;  %v2062_v4 = vld [vmem:[#allocation6 + $0x3f8] sm:$0xff]  ;;  %2097 = vmatprep.subr.mxu0 %v1998_v8  ;;  %v1995_v0 = vld [vmem:[#allocation6 + $0x1e0] sm:$0xff]  ;;  %v2057_v5 = vld [vmem:[#allocation6 + $0x3d0] sm:$0xff] }
 0x2d9   : > { %2168 = vmatprep.subr.mxu1 %v2062_v4  ;;  %2098 = vmatpush2.msra.mxu0 %v1997_v13  ;;  %v2032_v4 = vld [vmem:[#allocation6 + $0x308] sm:$0xff] }
 0x2da   : > { %v1633_v43 = vrot.slane %v1629_v37, 4  ;;  %2169 = vmatpush2.msra.mxu1 %v2061_v7  ;;  %2099 = vmatprep.subr.mxu0 %v1996_v18  ;;  %v2031_v7 = vld [vmem:[#allocation6 + $0x300] sm:$0xff]  ;;  %v1968_v8 = vld [vmem:[#allocation6 + $0x108] sm:$0xff] }
 0x2db   : > { %2170 = vmatprep.subr.mxu1 %v2060_v12  ;;  %2100 = vmatpush2.msra.mxu0 %v1995_v0 }
 0x2dc   : > { %v1635_v46 = vadd.f32 %v1633_v43, %v1629_v37  ;;  %2171 = vmatpush2.msra.mxu1 %v2059_v16  ;;  %v1994_v37 = vld [vmem:[#allocation6 + $0x1d8] sm:$0xff]  ;;  %v2056_v43 = vld [vmem:[#allocation6 + $0x3c8] sm:$0xff] }
 0x2dd   : > { %2172 = vmatprep.subr.mxu1 %v2058_v21  ;;  %2101 = vmatprep.subr.mxu0 %v1994_v37 }
 0x2de   : > { %v2462_v9 = vmul.f32 -1.442695, %v1635_v46  ;;  %2173 = vmatpush2.msra.mxu1 %v2057_v5  ;;  %v1993_v46 = vld [vmem:[#allocation6 + $0x1d0] sm:$0xff] }
 0x2df   : > { %2174 = vmatprep.subr.mxu1 %v2056_v43  ;;  %2102 = vmatpush2.msra.mxu0 %v1993_v46  ;;  %v2689_v5 = vld [vmem:[%s3026_s16 + $0x10] sm:$0xff]  ;;  %v2690_v43 = vld [vmem:[%s3026_s16 + $0x18] sm:$0xff] }
 0x2e0   : > { %2677 = vpow2.f32 %v2462_v9  ;;  %v2055_v9 = vld [vmem:[#allocation6 + $0x3c0] sm:$0xff] }
 0x2e1   : > { %2175 = vmatpush2.msra.mxu1 %v2055_v9  ;;  %v2691_v9 = vld [vmem:[%s3026_s16] sm:$0xff] }
 0x2ed   : > { %v2678_v14 = vpop.eup %2677 }
 0x2ee   : > { %v1639_v40 = vadd.f32 1.0, %v2678_v14  ;;  %v1992_v14 = vld [vmem:[#allocation6 + $0x1c8] sm:$0xff] }
 0x2ef   : > { %2103 = vmatprep.subr.mxu0 %v1992_v14 }
 0x2f0   : > { %2679 = vrcp.f32 %v1639_v40  ;;  %v2054_v40 = vld [vmem:[#allocation6 + $0x3b8] sm:$0xff]  ;;  %2104 = vmatpush2.msra.mxu0 %v1991_v15 }
 0x2f1   : > { %2176 = vmatprep.subr.mxu1 %v2054_v40  ;;  %2105 = vmatprep.subr.mxu0 %v1990_v63  ;;  %v2692_v40 = vld [vmem:[%s3026_s16 + $0x8] sm:$0xff] }
 0x2f2   : > { %2177 = vmatpush2.msra.mxu1 %v2053_v52  ;;  %2106 = vmatpush2.msra.mxu0 %v1989_v19  ;;  %v2693_v52 = vld [vmem:[%s3026_s16 + $0x50] sm:$0xff] }
 0x2f3   : > { %2178 = vmatprep.subr.mxu1 %v2052_v39  ;;  %2107 = vmatprep.subr.mxu0 %v1988_v10  ;;  %v2694_v39 = vld [vmem:[%s3026_s16 + $0x58] sm:$0xff] }
 0x2f4   : > { %2179 = vmatpush2.msra.mxu1 %v2051_v45  ;;  %2108 = vmatpush2.msra.mxu0 %v1987_v22 }
 0x2f5   : > { %2180 = vmatprep.subr.mxu1 %v2050_v20  ;;  %2109 = vmatprep.subr.mxu0 %v1986_v24 }
 0x2f6   : > { %2181 = vmatpush2.msra.mxu1 %v2049_v23  ;;  %2110 = vmatpush2.msra.mxu0 %v1985_v26  ;;  %v2695_v23 = vld [vmem:[%s3026_s16 + $0x20] sm:$0xff] }
 0x2f7   : > { %2182 = vmatprep.subr.mxu1 %v2048_v25  ;;  %2111 = vmatprep.subr.mxu0 %v1984_v28  ;;  %v2696_v26 = vld [vmem:[%s3026_s16 + $0x40] sm:$0xff]  ;;  %v2697_v28 = vld [vmem:[%s3026_s16 + $0x48] sm:$0xff] }
 0x2f8   : > { %2183 = vmatpush2.msra.mxu1 %v2047_v27  ;;  %2112 = vmatpush2.msra.mxu0 %v1983_v30  ;;  %v2698_v30 = vld [vmem:[%s3026_s16 + $0x28] sm:$0xff] }
 0x2f9   : > { %2184 = vmatprep.subr.mxu1 %v2046_v29  ;;  %2113 = vmatprep.subr.mxu0 %v1982_v32 }
 0x2fa   : > { %2185 = vmatpush2.msra.mxu1 %v2045_v31 }
 0x2fb   : > { %2186 = vmatprep.subr.mxu1 %v2044_v33  ;;  %v2699_v33 = vld [vmem:[%s3026_s16 + $0x80] sm:$0xff] }
 0x2fc   : > { %2187 = vmatpush2.msra.mxu1 %v2043_v34  ;;  %v2700_v34 = vld [vmem:[%s3026_s16 + $0x88] sm:$0xff] }
 0x2fd   : > { %v2680_v54 = vpop.eup %2679 }
 0x2fe   : > { %v3306_v17 = vrot.slane %v2680_v54, %v3303_v50  ;;  %v1664_v58 = vrot.slane %v2680_v54, %v3309_v44  ;;  %v3315_v38 = vrot.slane %v2680_v54, %v1682_v48  ;;  %v3320_v11 = vrot.slane %v2680_v54, %v1701_v42  ;;  %v1981_v54 = vld [vmem:[#allocation6 + $0x170] sm:$0xff]  ;;  %v1979_v48 = vld [vmem:[#allocation6 + $0x160] sm:$0xff] }
 0x2ff   : > { %2114 = vmatpush2.msra.mxu0 %v1981_v54  ;;  %v1971_v42 = vld [vmem:[#allocation6 + $0x120] sm:$0xff] }
 0x300   : > { %1651 = vbcast.lane.b32.xlu1 %v3306_v17, 264  ;;  %1647 = vbcast.lane.b32.xlu0 %v3306_v17, 256 }
 0x301   : > { %2115 = vmatprep.subr.mxu0 %v1980_v41 }
 0x302   : > { %2116 = vmatpush2.msra.mxu0 %v1979_v48 }
 0x303   : > { %2117 = vmatprep.subr.mxu0 %v1978_v53 }
 0x304   : > { %1666 = vbcast.lane.b32.xlu1 %v1664_v58, 256  ;;  %1685 = vbcast.lane.b32.xlu0 %v3315_v38, 256 }
 0x305   : > { %2118 = vmatpush2.msra.mxu0 %v1977_v2  ;;  %v2702_v2 = vld [vmem:[%s3026_s16 + $0x98] sm:$0xff] }
 0x306   : > { %2119 = vmatprep.subr.mxu0 %v1976_v56 }
 0x308   : > { %1670 = vbcast.lane.b32.xlu1 %v1664_v58, 264  ;;  %1655 = vbcast.lane.b32.xlu0 %v3306_v17, 272 }
 0x30c   : > { %1689 = vbcast.lane.b32.xlu1 %v3315_v38, 264  ;;  %1704 = vbcast.lane.b32.xlu0 %v3320_v11, 256 }
 0x310   : > { %1674 = vbcast.lane.b32.xlu1 %v1664_v58, 272  ;;  %1693 = vbcast.lane.b32.xlu0 %v3315_v38, 272 }
 0x314   : > { %1708 = vbcast.lane.b32.xlu1 %v3320_v11, 264  ;;  %1678 = vbcast.lane.b32.xlu0 %v1664_v58, 280  ;;  %v1975_v58 = vld [vmem:[#allocation6 + $0x140] sm:$0xff] }
 0x315   : > { %2120 = vmatpush2.msra.mxu0 %v1975_v58 }
 0x316   : > { %2121 = vmatprep.subr.mxu0 %v1974_v59  ;;  %v2703_v59 = vld [vmem:[%s3026_s16 + $0x60] sm:$0xff] }
 0x317   : > { %2122 = vmatpush2.msra.mxu0 %v1973_v61  ;;  %v2704_v61 = vld [vmem:[%s3026_s16 + $0x68] sm:$0xff] }
 0x318   : > { %1659 = vbcast.lane.b32.xlu1 %v3306_v17, 280  ;;  %1697 = vbcast.lane.b32.xlu0 %v3315_v38, 280  ;;  %v2042_v17 = vld [vmem:[#allocation6 + $0x358] sm:$0xff]  ;;  %v2037_v38 = vld [vmem:[#allocation6 + $0x330] sm:$0xff] }
 0x319   : > { %2188 = vmatprep.subr.mxu1 %v2042_v17  ;;  %2123 = vmatprep.subr.mxu0 %v1972_v51  ;;  %v2701_v17 = vld [vmem:[%s3026_s16 + $0x90] sm:$0xff] }
 0x31a   : > { %2189 = vmatpush2.msra.mxu1 %v2041_v55  ;;  %2124 = vmatpush2.msra.mxu0 %v1971_v42  ;;  %v2705_v42 = vld [vmem:[%s3026_s16 + $0xa0] sm:$0xff] }
 0x31b   : > { %2190 = vmatprep.subr.mxu1 %v2040_v49  ;;  %2125 = vmatprep.subr.mxu0 %v1970_v3  ;;  %v2706_v3 = vld [vmem:[%s3026_s16 + $0xa8] sm:$0xff] }
 0x31c   : > { %1712 = vbcast.lane.b32.xlu1 %v3320_v11, 272  ;;  %2191 = vmatpush2.msra.mxu1 %v2039_v35 }
 0x31d   : > { %2192 = vmatprep.subr.mxu1 %v2038_v57  ;;  %2126 = vmatpush2.msra.mxu0 %v1969_v6 }
 0x31e   : > { %2193 = vmatpush2.msra.mxu1 %v2037_v38  ;;  %2127 = vmatprep.subr.mxu0 %v1968_v8  ;;  %v2707_v8 = vld [vmem:[%s3026_s16 + $0xc0] sm:$0xff] }
 0x31f   : > { %2194 = vmatprep.subr.mxu1 %v2036_v60 }
 0x320   : > { %1716 = vbcast.lane.b32.xlu1 %v3320_v11, 280  ;;  %2195 = vmatpush2.msra.mxu1 %v2035_v62  ;;  %v1967_v11 = vld [vmem:[#allocation6 + $0x100] sm:$0xff] }
 0x321   : > { %2196 = vmatprep.subr.mxu1 %v2034_v36  ;;  %2128 = vmatpush2.msra.mxu0 %v1967_v11 }
 0x322   : > { %2197 = vmatpush2.msra.mxu1 %v2033_v1 }
 0x323   : > { %2198 = vmatprep.subr.mxu1 %v2032_v4 }
 0x324   : > { %2199 = vmatpush2.msra.mxu1 %v2031_v7 }
 0x372   : > { %v1652_v12 = vpop.permute.xlu1 %1651  ;;  %v1648_v13 = vpop.permute.xlu0 %1647 }
 0x373   : > { %v3331_v37 = vmul.f32 %v2689_v5, %v1652_v12  ;;  %v3334_v46 = vmul.f32 %v2690_v43, %v1652_v12  ;;  %v3337_v14 = vmul.f32 %v2691_v9, %v1648_v13  ;;  %v3340_v15 = vmul.f32 %v2692_v40, %v1648_v13  ;;  %v2708_v12 = vld [vmem:[%s3026_s16 + $0xc8] sm:$0xff]  ;;  %v2709_v40 = vld [vmem:[%s3026_s16 + $0xd0] sm:$0xff] }
 0x375   : > { %v1750_v20 = vadd.f32 %v3331_v37, %v3337_v14  ;;  %v1759_v22 = vadd.f32 %v3334_v46, %v3340_v15  ;;  %v1831_v25 = vmax.f32 %v3337_v14, %v3331_v37  ;;  %v1840_v32 = vmax.f32 %v3340_v15, %v3334_v46 }
 0x376   : > { %v1667_v16 = vpop.permute.xlu1 %1666  ;;  %v1686_v18 = vpop.permute.xlu0 %1685 }
 0x377   : > { %v3358_v27 = vmul.f32 %v2696_v26, %v1667_v16  ;;  %v3361_v29 = vmul.f32 %v2697_v28, %v1667_v16  ;;  %v3369_v54 = vmul.f32 %v2699_v33, %v1686_v18  ;;  %v3372_v41 = vmul.f32 %v2700_v34, %v1686_v18 }
 0x37a   : > { %v1671_v21 = vpop.permute.xlu1 %1670  ;;  %v1656_v0 = vpop.permute.xlu0 %1655 }
 0x37b   : > { %v3343_v63 = vmul.f32 %v2693_v52, %v1671_v21  ;;  %v3346_v19 = vmul.f32 %v2694_v39, %v1671_v21  ;;  %v3353_v24 = vmul.f32 %v2695_v23, %v1656_v0  ;;  %v3364_v31 = vmul.f32 %v2698_v30, %v1656_v0  ;;  %v2710_v39 = vld [vmem:[%s3026_s16 + $0x70] sm:$0xff] }
 0x37d   : > { %v1768_v55 = vadd.f32 %v3343_v63, %v3358_v27  ;;  %v1777_v53 = vadd.f32 %v3346_v19, %v3361_v29  ;;  %v1849_v49 = vmax.f32 %v3358_v27, %v3343_v63  ;;  %v1858_v58 = vmax.f32 %v3361_v29, %v3346_v19 }
 0x37e   : > { %v1690_v45 = vpop.permute.xlu1 %1689  ;;  %v1705_v10 = vpop.permute.xlu0 %1704  ;;  %v1751_v38 = vadd.f32 %v1750_v20, %v3353_v24  ;;  %v1760_v51 = vadd.f32 %v1759_v22, %v3364_v31  ;;  %v1832_v36 = vmax.f32 %v1831_v25, %v3353_v24  ;;  %v1841_v6 = vmax.f32 %v1840_v32, %v3364_v31  ;;  %v2712_v32 = vld [vmem:[%s3026_s16 + $0xd8] sm:$0xff] }
 0x37f   : > { %v3375_v48 = vmul.f32 %v2701_v17, %v1690_v45  ;;  %v3384_v35 = vmul.f32 %v2702_v2, %v1690_v45  ;;  %v3407_v11 = vmul.f32 %v2707_v8, %v1705_v10  ;;  %v3410_v13 = vmul.f32 %v2708_v12, %v1705_v10  ;;  %v2711_v10 = vld [vmem:[%s3026_s16 + $0x78] sm:$0xff] }
 0x381   : > { %3698 = vst [vmem:[#allocation12_spill] sm:$0xff] %v3384_v35  ;;  %v1786_v7 = vadd.f32 %v3375_v48, %v3369_v54  ;;  %3701 = vst [vmem:[#allocation15_spill] sm:$0xff] %v3407_v11  ;;  %v1795_v16 = vadd.f32 %v3384_v35, %v3372_v41  ;;  %v1867_v18 = vmax.f32 %v3369_v54, %v3375_v48 }
 0x382   : > { %v1675_v56 = vpop.permute.xlu1 %1674  ;;  %v1694_v57 = vpop.permute.xlu0 %1693  ;;  %3702 = vst [vmem:[#allocation16_spill] sm:$0xff] %v3410_v13  ;;  %v1876_v21 = vmax.f32 %v3372_v41, %v3384_v35 }
 0x383   : > { %v3390_v60 = vmul.f32 %v2703_v59, %v1675_v56  ;;  %v3393_v62 = vmul.f32 %v2704_v61, %v1675_v56  ;;  %v3398_v1 = vmul.f32 %v2705_v42, %v1694_v57  ;;  %v3401_v4 = vmul.f32 %v2706_v3, %v1694_v57  ;;  %v2713_v57 = vld [vmem:[%s3026_s16 + $0x30] sm:$0xff]  ;;  %v2714_v59 = vld [vmem:[%s3026_s16 + $0x38] sm:$0xff] }
 0x384   : > { %v2715_v42 = vld [vmem:[%s3026_s16 + $0xb0] sm:$0xff] }
 0x385   : > { %3699 = vst [vmem:[#allocation13_spill] sm:$0xff] %v3398_v1  ;;  %3700 = vst [vmem:[#allocation14_spill] sm:$0xff] %v3401_v4  ;;  %v1769_v0 = vadd.f32 %v1768_v55, %v3390_v60  ;;  %v1778_v9 = vadd.f32 %v1777_v53, %v3393_v62  ;;  %v1850_v22 = vmax.f32 %v1849_v49, %v3390_v60 }
 0x386   : > { %v1709_v5 = vpop.permute.xlu1 %1708  ;;  %v1679_v43 = vpop.permute.xlu0 %1678  ;;  %v1859_v23 = vmax.f32 %v1858_v58, %v3393_v62  ;;  %v3432_v25 = vadd.f32 %v1786_v7, %v3398_v1  ;;  %v3435_v26 = vadd.f32 %v1795_v16, %v3401_v4  ;;  %v3438_v28 = vmax.f32 %v1867_v18, %v3398_v1  ;;  %v2716_v7 = vld [vmem:[%s3026_s16 + $0xb8] sm:$0xff] }
 0x387   : > { %v3421_v52 = vmul.f32 %v2709_v40, %v1709_v5  ;;  %v3424_v45 = vmul.f32 %v2710_v39, %v1679_v43  ;;  %v3427_v20 = vmul.f32 %v2711_v10, %v1679_v43  ;;  %v3441_v30 = vmax.f32 %v1876_v21, %v3401_v4 }
 0x388   : > { %v3444_v33 = vmul.f32 %v2712_v32, %v1709_v5 }
 0x389   : > { %3703 = vst [vmem:[#allocation17_spill] sm:$0xff] %v3421_v52  ;;  %v3448_v34 = vadd.f32 %v3421_v52, %v3407_v11  ;;  %v1770_v17 = vadd.f32 %v1769_v0, %v3424_v45  ;;  %v1779_v55 = vadd.f32 %v1778_v9, %v3427_v20  ;;  %v1851_v53 = vmax.f32 %v1850_v22, %v3424_v45 }
 0x38a   : > { %3704 = vst [vmem:[#allocation18_spill] sm:$0xff] %v3444_v33  ;;  %v1860_v49 = vmax.f32 %v1859_v23, %v3427_v20  ;;  %v1660_v2 = vpop.permute.xlu1 %1659  ;;  %v1698_v56 = vpop.permute.xlu0 %1697 }
 0x38b   : > { %v3455_v58 = vmul.f32 %v2713_v57, %v1660_v2  ;;  %v3458_v61 = vmul.f32 %v2714_v59, %v1660_v2  ;;  %v3461_v3 = vmul.f32 %v2715_v42, %v1698_v56  ;;  %v3464_v8 = vmul.f32 %v2716_v7, %v1698_v56 }
 0x38c   : > { %v1771_v12 = vrot.slane %v1770_v17, 4  ;;  %v1780_v16 = vrot.slane %v1779_v55, 4  ;;  %v1852_v18 = vrot.slane %v1851_v53, 4  ;;  %v1861_v21 = vrot.slane %v1860_v49, 4 }
 0x38d   : > { %3705 = vst [vmem:[#allocation19_spill] sm:$0xff] %v3461_v3  ;;  %3706 = vst [vmem:[#allocation20_spill] sm:$0xff] %v3464_v8  ;;  %v1752_v0 = vadd.f32 %v1751_v38, %v3455_v58  ;;  %v1761_v5 = vadd.f32 %v1760_v51, %v3458_v61  ;;  %v1833_v43 = vmax.f32 %v1832_v36, %v3455_v58 }
 0x38e   : > { %v1842_v9 = vmax.f32 %v1841_v6, %v3458_v61  ;;  %v1772_v40 = vadd.f32 %v1771_v12, %v1770_v17  ;;  %v1781_v39 = vadd.f32 %v1780_v16, %v1779_v55  ;;  %v1853_v10 = vmax.f32 %v1851_v53, %v1852_v18 }
 0x38f   : > { %v1862_v22 = vmax.f32 %v1860_v49, %v1861_v21  ;;  %v1753_v23 = vrot.slane %v1752_v0, 4  ;;  %v1762_v32 = vrot.slane %v1761_v5, 4  ;;  %v1834_v2 = vrot.slane %v1833_v43, 4 }
 0x390   : > { %v1843_v56 = vrot.slane %v1842_v9, 4  ;;  %v1773_v57 = vrot.slane %v1772_v40, 2  ;;  %v1782_v59 = vrot.slane %v1781_v39, 2  ;;  %v1854_v42 = vrot.slane %v1853_v10, 2 }
 0x391   : > { %v1863_v7 = vrot.slane %v1862_v22, 2  ;;  %v1754_v4 = vadd.f32 %v1753_v23, %v1752_v0  ;;  %v1763_v38 = vadd.f32 %v1762_v32, %v1761_v5  ;;  %v1835_v1 = vmax.f32 %v1833_v43, %v1834_v2  ;;  %v1713_v5 = vpop.permute.xlu1 %1712 }
 0x392   : > { %v1844_v51 = vmax.f32 %v1842_v9, %v1843_v56  ;;  %v1774_v35 = vadd.f32 %v1773_v57, %v1772_v40  ;;  %v3470_v36 = vadd.f32 %v1782_v59, %v1781_v39  ;;  %v1855_v6 = vmax.f32 %v1853_v10, %v1854_v42 }
 0x393   : > { %v3472_v17 = vmax.f32 %v1862_v22, %v1863_v7  ;;  %v1755_v55 = vrot.slane %v1754_v4, 2  ;;  %v1764_v53 = vrot.slane %v1763_v38, 2  ;;  %v1836_v49 = vrot.slane %v1835_v1, 2 }
 0x394   : > { %v1845_v12 = vrot.slane %v1844_v51, 2  ;;  %v1813_v16 = vadd.f32 %v3444_v33, %v3410_v13  ;;  %v1885_v18 = vmax.f32 %v3407_v11, %v3421_v52  ;;  %v1775_v21 = vrot.slane %v1774_v35, 1 }
 0x395   : > { %v1856_v0 = vrot.slane %v1855_v6, 1  ;;  %v1894_v43 = vmax.f32 %v3410_v13, %v3444_v33  ;;  %v1756_v9 = vadd.f32 %v1755_v55, %v1754_v4  ;;  %v1765_v40 = vadd.f32 %v1764_v53, %v1763_v38 }
 0x396   : > { %v1837_v39 = vmax.f32 %v1835_v1, %v1836_v49  ;;  %v1865_v22 = vrot.slane %v3472_v17, 1  ;;  %v1788_v23 = vadd.f32 %v3432_v25, %v3461_v3  ;;  %v1797_v32 = vadd.f32 %v3435_v26, %v3464_v8  ;;  %v2717_v25 = vld [vmem:[%s3026_s16 + $0xe0] sm:$0xff]  ;;  %v2718_v26 = vld [vmem:[%s3026_s16 + $0xe8] sm:$0xff] }
 0x397   : > { %v3486_v2 = vadd.f32 %v1775_v21, %v1774_v35  ;;  %v3488_v56 = vmax.f32 %v1855_v6, %v1856_v0  ;;  %v1757_v57 = vrot.slane %v1756_v9, 1  ;;  %v1846_v4 = vmax.f32 %v1844_v51, %v1845_v12  ;;  %v1717_v21 = vpop.permute.xlu1 %1716 }
 0x398   : > { %v1789_v59 = vrot.slane %v1788_v23, 4  ;;  %v1798_v42 = vrot.slane %v1797_v32, 4  ;;  %v1869_v1 = vmax.f32 %v3438_v28, %v3461_v3  ;;  %v1878_v7 = vmax.f32 %v3441_v30, %v3464_v8 }
 0x399   : > { %v1766_v38 = vrot.slane %v1765_v40, 1  ;;  %v1838_v55 = vrot.slane %v1837_v39, 1  ;;  %v3495_v53 = vmul.f32 %v2717_v25, %v1713_v5  ;;  %v3498_v35 = vmul.f32 %v2718_v26, %v1713_v5 }
 0x39a   : > { %v1790_v6 = vadd.f32 %v1789_v59, %v1788_v23  ;;  %v1799_v49 = vadd.f32 %v1798_v42, %v1797_v32  ;;  %v1870_v51 = vrot.slane %v1869_v1, 4  ;;  %v1879_v12 = vrot.slane %v1878_v7, 4  ;;  %v2719_v32 = vld [vmem:[%s3026_s16 + $0xf0] sm:$0xff]  ;;  %v2720_v42 = vld [vmem:[%s3026_s16 + $0xf8] sm:$0xff]  ;;  %s2063_s16 = sld [smem:[#allocation2]] }
 0x39b   : > { %3707 = vst [vmem:[#allocation21_spill] sm:$0xff] %v3495_v53  ;;  %3708 = vst [vmem:[#allocation22_spill] sm:$0xff] %v3498_v35  ;;  %v1758_v0 = vadd.f32 %v1757_v57, %v1756_v9  ;;  %v1847_v28 = vrot.slane %v1846_v4, 1  ;;  %v1805_v30 = vadd.f32 %v3448_v34, %v3495_v53  ;;  %v1814_v10 = vadd.f32 %v1813_v16, %v3498_v35 }
 0x39c   : > { %v1791_v33 = vrot.slane %v1790_v6, 2  ;;  %v1800_v25 = vrot.slane %v1799_v49, 2  ;;  %v1871_v52 = vmax.f32 %v1869_v1, %v1870_v51  ;;  %v1880_v13 = vmax.f32 %v1878_v7, %v1879_v12 }
 0x39d   : > { %v1886_v5 = vmax.f32 %v1885_v18, %v3495_v53  ;;  %v1895_v23 = vmax.f32 %v1894_v43, %v3498_v35  ;;  %v3506_v59 = vmul.f32 %v2719_v32, %v1717_v21  ;;  %v3509_v26 = vmul.f32 %v2720_v42, %v1717_v21 }
 0x39e   : > { %v1839_v9 = vmax.f32 %v1837_v39, %v1838_v55  ;;  %v1792_v57 = vadd.f32 %v1791_v33, %v1790_v6  ;;  %v1872_v11 = vrot.slane %v1871_v52, 2  ;;  %v1881_v34 = vrot.slane %v1880_v13, 2 }
 0x39f   : > { %v1806_v16 = vadd.f32 %v1805_v30, %v3506_v59  ;;  %v1815_v8 = vadd.f32 %v1814_v10, %v3509_v26  ;;  %v1887_v1 = vmax.f32 %v1886_v5, %v3506_v59  ;;  %v1896_v18 = vmax.f32 %v1895_v23, %v3509_v26 }
 0x3a0   : > { %v1801_v7 = vadd.f32 %v1800_v25, %v1799_v49  ;;  %v1873_v43 = vmax.f32 %v1871_v52, %v1872_v11  ;;  %v1882_v51 = vmax.f32 %v1880_v13, %v1881_v34  ;;  %v1848_v12 = vmax.f32 %v1846_v4, %v1847_v28 }
 0x3a1   : > { %v1807_v32 = vrot.slane %v1806_v16, 4  ;;  %v1816_v35 = vrot.slane %v1815_v8, 4  ;;  %v1888_v21 = vrot.slane %v1887_v1, 4  ;;  %v1897_v42 = vrot.slane %v1896_v18, 4 }
 0x3a2   : > { %v1793_v39 = vrot.slane %v1792_v57, 1  ;;  %v1866_v33 = vmax.f32 %v3472_v17, %v1865_v22  ;;  %v1883_v55 = vrot.slane %v1882_v51, 1  ;;  %v1767_v6 = vadd.f32 %v1766_v38, %v1765_v40 }
 0x3a3   : > { %v1808_v30 = vadd.f32 %v1807_v32, %v1806_v16  ;;  %v1817_v53 = vadd.f32 %v1816_v35, %v1815_v8  ;;  %v1889_v10 = vmax.f32 %v1887_v1, %v1888_v21  ;;  %v1898_v3 = vmax.f32 %v1896_v18, %v1897_v42 }
 0x3a4   : > { %v1874_v5 = vrot.slane %v1873_v43, 1  ;;  %v1930_v23 = vsel %vm561_vm4, %v1866_v33, %v1848_v12  ;;  %v3709_v11 = vrot.slane %v3470_v36, 1  ;;  %v1802_v52 = vrot.slane %v1801_v7, 1 }
 0x3a5   : > { %v1809_v4 = vrot.slane %v1808_v30, 2  ;;  %v1818_v49 = vrot.slane %v1817_v53, 2  ;;  %v1890_v28 = vrot.slane %v1889_v10, 2  ;;  %v1899_v25 = vrot.slane %v1898_v3, 2 }
 0x3a6   : > { %v1785_v13 = vadd.f32 %v3709_v11, %v3470_v36  ;;  %v1884_v34 = vmax.f32 %v1882_v51, %v1883_v55  ;;  %v1927_v17 = vsel %vm561_vm4, %v3488_v56, %v1839_v9  ;;  %v1803_v40 = vadd.f32 %v1802_v52, %v1801_v7 }
 0x3a7   : > { %v1824_v8 = vmul.f32 0.03125, %v1767_v6  ;;  %v1810_v22 = vadd.f32 %v1809_v4, %v1808_v30  ;;  %v1891_v38 = vmax.f32 %v1889_v10, %v1890_v28  ;;  %v1900_v35 = vmax.f32 %v1898_v3, %v1899_v25 }
 0x3a8   : > { %v1819_v16 = vadd.f32 %v1818_v49, %v1817_v53  ;;  %v1875_v1 = vmax.f32 %v1873_v43, %v1874_v5  ;;  %v1826_v18 = vmul.f32 0.03125, %v1785_v13  ;;  %v1794_v12 = vadd.f32 %v1793_v39, %v1792_v57 }
 0x3a9   : > { %v1823_v32 = vmul.f32 0.03125, %v1758_v0  ;;  %v1901_v36 = vrot.slane %v1900_v35, 1  ;;  %v1892_v21 = vrot.slane %v1891_v38, 1  ;;  %v1811_v33 = vrot.slane %v1810_v22, 1 }
 0x3aa   : > { %v1820_v42 = vrot.slane %v1819_v16, 1  ;;  %v1828_v11 = vmul.f32 0.03125, %v1803_v40  ;;  %v1914_v51 = vsel %vm561_vm4, %v1826_v18, %v1824_v8  ;;  %v1825_v55 = vmul.f32 0.03125, %v3486_v2 }
 0x3ab   : > { %v1902_v56 = vmax.f32 %v1900_v35, %v1901_v36  ;;  %v1893_v9 = vmax.f32 %v1891_v38, %v1892_v21  ;;  %v1827_v6 = vmul.f32 0.03125, %v1794_v12  ;;  %v1931_v3 = vsel %vm563_vm6, %v1884_v34, %v1930_v23 }
 0x3ac   : > { %v1821_v7 = vadd.f32 %v1820_v42, %v1819_v16  ;;  %v1928_v53 = vsel %vm563_vm6, %v1875_v1, %v1927_v17  ;;  %v1812_v43 = vadd.f32 %v1811_v33, %v1810_v22  ;;  %v1911_v0 = vsel %vm561_vm4, %v1825_v55, %v1823_v32 }
 0x3ad   : > { %v1932_v57 = vsel %vm565_vm8, %v1902_v56, %v1931_v3  ;;  %v1929_v39 = vsel %vm565_vm8, %v1893_v9, %v1928_v53  ;;  %v1915_v10 = vsel %vm563_vm6, %v1828_v11, %v1914_v51  ;;  %v1912_v13 = vsel %vm563_vm6, %v1827_v6, %v1911_v0 }
 0x3ae   : > { %v1830_v30 = vmul.f32 0.03125, %v1821_v7  ;;  %2200 = vmatprep.mubr.f32.mxu1 %v1932_v57  ;;  %v1829_v2 = vmul.f32 0.03125, %v1812_v43  ;;  %v2064_v52 = vstv %s2063_s16  ;;  %v2851_v12 = vmov 1966171168  }
 0x3af   : > { %2201 = vmatmul.mubr.f32.vlgmr.msra.gmra.mxu1 %v1929_v39  ;;  %v2223_v32 = vunpack.c.l.s4 %v2851_v12 }
 0x3b0   : > { %v1916_v5 = vsel %vm565_vm8, %v1830_v30, %v1915_v10  ;;  %v1913_v23 = vsel %vm565_vm8, %v1829_v2, %v1912_v13 }
 0x3b1   : > { %2129 = vmatprep.mubr.f32.mxu0 %v1916_v5  ;;  %v2224_v36 = vunpack.c.0.s8 %v2223_v32 }
 0x3b2   : > { %2130 = vmatmul.mubr.f32.vlgmr.msra.gmra.mxu0 %v1913_v23 }
 0x3b3   : > { %v2227_v42 = vsub.s32 %v2224_v36, %v3144_v47 }
 0x46f   : > { %v2202_v4 = vpop.f32.mrf.mxu1 }
 0x471   : > { %v2204_v40 = vpop.f32.mrf.mxu1 }
 0x472   : > { %v2131_v49 = vpop.f32.mrf.mxu0 }
 0x473   : > { %v2132_v28 = vadd.f32 %v2131_v49, %v2064_v52 }
 0x474   : > { %v2133_v25 = vpop.f32.mrf.mxu0 }
 0x475   : > { %v2203_v34 = vadd.f32 %v2202_v4, %v2132_v28  ;;  %v2134_v17 = vadd.f32 %v2133_v25, %v2064_v52  ;;  %v3714_v28 = vld [vmem:[#allocation20_spill] sm:$0xff]  ;;  %v3715_v25 = vld [vmem:[#allocation15_spill] sm:$0xff] }
 0x477   : > { %v2463_v8 = vmul.f32 -1.442695, %v2203_v34  ;;  %v2205_v22 = vadd.f32 %v2204_v40, %v2134_v17  ;;  %v3716_v34 = vld [vmem:[#allocation16_spill] sm:$0xff]  ;;  %v3717_v40 = vld [vmem:[#allocation17_spill] sm:$0xff] }
 0x479   : > { %2681 = vpow2.f32 %v2463_v8  ;;  %v2464_v38 = vmul.f32 -1.442695, %v2205_v22  ;;  %v3718_v22 = vld [vmem:[#allocation18_spill] sm:$0xff] }
 0x47b   : > { %2683 = vpow2.f32 %v2464_v38 }
 0x486   : > { %v2682_v35 = vpop.eup %2681 }
 0x487   : > { %v2213_v16 = vadd.f32 1.0, %v2682_v35  ;;  %v3719_v35 = vld [vmem:[#allocation21_spill] sm:$0xff] }
 0x488   : > { %v2684_v1 = vpop.eup %2683 }
 0x489   : > { %v2214_v18 = vadd.f32 1.0, %v2684_v1  ;;  %2685 = vrcp.f32 %v2213_v16  ;;  %v3720_v1 = vld [vmem:[#allocation22_spill] sm:$0xff] }
 0x48b   : > { %2687 = vrcp.f32 %v2214_v18 }
 0x496   : > { %v2686_v21 = vpop.eup %2685 }
 0x498   : > { %v2688_v33 = vpop.eup %2687 }
 0x499   : > { %v2221_v11 = vcombine.low %v2686_v21, %v2688_v33 }
 0x49b   : > { %v2228_v51 = vrot.slane %v2221_v11, %v2227_v42 }
 0x49d   : > { %v2229_v55 = vcombine.high %v2228_v51, %v2228_v51  ;;  %v2236_v56 = vrot.slane %v2228_v51, %v2227_v42 }
 0x49f   : > { %v2243_v9 = vrot.slane %v2229_v55, %v2227_v42  ;;  %v2244_v7 = vcombine.high %v2236_v56, %v2236_v56  ;;  %v2249_v6 = vrot.slane %v2236_v56, %v3303_v50  ;;  %v2253_v3 = vrot.slane %v2236_v56, %v3309_v44 }
 0x4a1   : > { %v2245_v53 = vcombine.high %v2243_v9, %v2243_v9  ;;  %v2257_v43 = vrot.slane %v2243_v9, %v3303_v50  ;;  %v2261_v0 = vrot.slane %v2243_v9, %v3309_v44  ;;  %v2265_v57 = vrot.slane %v2244_v7, %v3303_v50 }
 0x4a2   : > { %v2269_v47 = vrot.slane %v2244_v7, %v3309_v44  ;;  %v2286_v39 = vmul.f32 %v2249_v6, %v3337_v14  ;;  %v2287_v30 = vmul.f32 %v2253_v3, %v3340_v15  ;;  %v2288_v10 = vmul.f32 %v2249_v6, %v3331_v37 }
 0x4a3   : > { %v2273_v2 = vrot.slane %v2245_v53, %v3303_v50  ;;  %v2277_v5 = vrot.slane %v2245_v53, %v3309_v44  ;;  %v2289_v13 = vmul.f32 %v2253_v3, %v3334_v46  ;;  %v2290_v23 = vmul.f32 %v2249_v6, %v3353_v24 }
 0x4a4   : > { %v2291_v52 = vmul.f32 %v2253_v3, %v3364_v31  ;;  %v2292_v4 = vmul.f32 %v2249_v6, %v3455_v58  ;;  %v2293_v49 = vmul.f32 %v2253_v3, %v3458_v61  ;;  %v2294_v14 = vmul.f32 %v2257_v43, %v3358_v27  ;;  %2318 = vst [vmem:[%s3553_s17] sm:$0xff] %v2286_v39  ;;  %v3710_v31 = vld [vmem:[#allocation12_spill] sm:$0xff]  ;;  %v3713_v58 = vld [vmem:[#allocation19_spill] sm:$0xff] }
 0x4a5   : > { %2319 = vst [vmem:[%s3553_s17 + $0x8] sm:$0xff] %v2287_v30  ;;  %2320 = vst [vmem:[%s3553_s17 + $0x10] sm:$0xff] %v2288_v10  ;;  %v2295_v50 = vmul.f32 %v2261_v0, %v3361_v29  ;;  %v2296_v44 = vmul.f32 %v2257_v43, %v3343_v63  ;;  %v2297_v37 = vmul.f32 %v2261_v0, %v3346_v19 }
 0x4a6   : > { %v2298_v46 = vmul.f32 %v2257_v43, %v3390_v60  ;;  %2321 = vst [vmem:[%s3553_s17 + $0x18] sm:$0xff] %v2289_v13  ;;  %2322 = vst [vmem:[%s3553_s17 + $0x20] sm:$0xff] %v2290_v23  ;;  %v2299_v15 = vmul.f32 %v2261_v0, %v3393_v62  ;;  %v2300_v24 = vmul.f32 %v2257_v43, %v3424_v45  ;;  %v3711_v62 = vld [vmem:[#allocation13_spill] sm:$0xff] }
 0x4a7   : > { %v2301_v27 = vmul.f32 %v2261_v0, %v3427_v20  ;;  %v2302_v29 = vmul.f32 %v2265_v57, %v3369_v54  ;;  %2323 = vst [vmem:[%s3553_s17 + $0x28] sm:$0xff] %v2291_v52  ;;  %2324 = vst [vmem:[%s3553_s17 + $0x30] sm:$0xff] %v2292_v4  ;;  %v2303_v63 = vmul.f32 %v2269_v47, %v3372_v41  ;;  %v3712_v54 = vld [vmem:[#allocation14_spill] sm:$0xff] }
 0x4a8   : > { %2325 = vst [vmem:[%s3553_s17 + $0x38] sm:$0xff] %v2293_v49  ;;  %2326 = vst [vmem:[%s3553_s17 + $0x40] sm:$0xff] %v2294_v14  ;;  %v2304_v19 = vmul.f32 %v2265_v57, %v3375_v48  ;;  %v2305_v60 = vmul.f32 %v2269_v47, %v3710_v31  ;;  %v2306_v45 = vmul.f32 %v2265_v57, %v3711_v62 }
 0x4a9   : > { %2327 = vst [vmem:[%s3553_s17 + $0x48] sm:$0xff] %v2295_v50  ;;  %2328 = vst [vmem:[%s3553_s17 + $0x50] sm:$0xff] %v2296_v44  ;;  %v2307_v20 = vmul.f32 %v2269_v47, %v3712_v54  ;;  %v2308_v61 = vmul.f32 %v2265_v57, %v3713_v58  ;;  %v2309_v41 = vmul.f32 %v2269_v47, %v3714_v28 }
 0x4aa   : > { %2329 = vst [vmem:[%s3553_s17 + $0x58] sm:$0xff] %v2297_v37  ;;  %2330 = vst [vmem:[%s3553_s17 + $0x60] sm:$0xff] %v2298_v46  ;;  %v2310_v48 = vmul.f32 %v2273_v2, %v3715_v25  ;;  %v2311_v17 = vmul.f32 %v2277_v5, %v3716_v34  ;;  %v2312_v8 = vmul.f32 %v2273_v2, %v3717_v40 }
 0x4ab   : > { %2331 = vst [vmem:[%s3553_s17 + $0x68] sm:$0xff] %v2299_v15  ;;  %2332 = vst [vmem:[%s3553_s17 + $0x70] sm:$0xff] %v2300_v24  ;;  %v2313_v38 = vmul.f32 %v2277_v5, %v3718_v22  ;;  %v2314_v16 = vmul.f32 %v2273_v2, %v3719_v35  ;;  %v2315_v18 = vmul.f32 %v2277_v5, %v3720_v1 }
 0x4ac   : > { %2333 = vst [vmem:[%s3553_s17 + $0x78] sm:$0xff] %v2301_v27  ;;  %2334 = vst [vmem:[%s3553_s17 + $0x80] sm:$0xff] %v2302_v29  ;;  %v2316_v12 = vmul.f32 %v2273_v2, %v3506_v59  ;;  %v2317_v32 = vmul.f32 %v2277_v5, %v3509_v26 }
 0x4ad   : > { %2335 = vst [vmem:[%s3553_s17 + $0x88] sm:$0xff] %v2303_v63  ;;  %2336 = vst [vmem:[%s3553_s17 + $0x90] sm:$0xff] %v2304_v19 }
 0x4ae   : > { %2337 = vst [vmem:[%s3553_s17 + $0x98] sm:$0xff] %v2305_v60  ;;  %2338 = vst [vmem:[%s3553_s17 + $0xa0] sm:$0xff] %v2306_v45 }
 0x4af   : > { %2339 = vst [vmem:[%s3553_s17 + $0xa8] sm:$0xff] %v2307_v20  ;;  %2340 = vst [vmem:[%s3553_s17 + $0xb0] sm:$0xff] %v2308_v61 }
 0x4b0   : > { %2341 = vst [vmem:[%s3553_s17 + $0xb8] sm:$0xff] %v2309_v41  ;;  %2342 = vst [vmem:[%s3553_s17 + $0xc0] sm:$0xff] %v2310_v48 }
 0x4b1   : > { %2343 = vst [vmem:[%s3553_s17 + $0xc8] sm:$0xff] %v2311_v17  ;;  %2344 = vst [vmem:[%s3553_s17 + $0xd0] sm:$0xff] %v2312_v8 }
 0x4b2   : > { %2345 = vst [vmem:[%s3553_s17 + $0xd8] sm:$0xff] %v2313_v38  ;;  %2346 = vst [vmem:[%s3553_s17 + $0xe0] sm:$0xff] %v2314_v16 }
 0x4b3   : > { %2347 = vst [vmem:[%s3553_s17 + $0xe8] sm:$0xff] %v2315_v18  ;;  %2348 = vst [vmem:[%s3553_s17 + $0xf0] sm:$0xff] %v2316_v12 }
 0x4b4   : > { %2349 = vst [vmem:[%s3553_s17 + $0xf8] sm:$0xff] %v2317_v32 }
 0x4b5   : > { %2788 = shalt.err (!%p2785_p0)
}
 0x4b6   : > { %s2789_s30 = scalar_lea.hbm %s3601_s13, 4096  ;;  %s2793_s16 = scalar_lea.hbm %s3667_s7, 8192 }
 0x4b7   : > { %p2790_p5 = scmp.ne.s32.totalorder %s3601_s13, %s2789_s30  ;;  %p2794_p4 = scmp.lt.s32.totalorder %s3601_s13, %s3667_s7 }
 0x4b8   : > { %p2795_p6 = scmp.lt.s32.totalorder %s2793_s16, %s2789_s30 }
 0x4b9   : > { %p2791_p2 = pnand %p2790_p5, %p3721_p11 }
 0x4ba   : > { %p2796_p8 = por %p2795_p6, %p2794_p4 }
 0x4bb   : > { %p2792_p1 = pneg %p2791_p2 }
 0x4bd   : > { %p2797_p3 = pnand %p2796_p8, %p2792_p1 }
 0x4bf   : > { %2800 = shalt.err (!%p2797_p3)
}
 0x4c0   : > { %s2853_s6 = smov 256   ;;  %s2854_s20 = smov 16  }
 0x4c1   : > { %2619 = dma.vmem_to_hbm [thread:$0]  (%p3721_p11), %s3603_s15, 4096, %s3601_s13, %s2351_s12, %s2853_s6, %s2853_s6, %s2854_s20  }
 0x4c2 PF: > { %s2380_s24 = sand.u32 1, %s2831_s26   ;;  %p3722_p7 = scmp.ne.s32.totalorder %s3686_s9, 0 }
 0x4c3   : > { %p3723_p9 = scmp.ge.s32.totalorder %s2843_s29, 2  ;;  %s2381_s25 = scalar_lea.sflag [#allocation5], %s2380_s24 }
 0x4c5   : > { %p2630_p10 = pnand %p3723_p9, %p3722_p7 }
 0x4c7   : > { %p2631_p12 = pneg %p2630_p10 }
 0x4c9   : > { %2826 = dma.done.wait (%p2631_p12), %s2381_s25, 4096  }
 0x4ca   : > { %2828 = vsyncadd (%p2631_p12), %s2381_s25, 4294963200  ;;  %p22_p13 = scmp.ge.s32.totalorder %s2952_s14, 4   ;;  %s3724_s26 = smov %s2835_s27 }
 0x4cb   : > { %s3725_s27 = smov %s2839_s28  ;;  %s3726_s28 = smov %s2972_s22 }
 0x4cc   : > { %s3727_s29 = smov %s2952_s14  ;;  %24 = sbr.rel (!%p22_p13) target bundleno = 8 (0x8), region = 97 }
 0x4d1   :  { %2386 = vsyncpa [#allocation4], 1 }
 0x4d2   :  { %2388 = vsyncpa [#allocation4 + $0x1], 1 }
 0x4d3   :  { %2389 = vsyncpa [#allocation7], 1 }
 0x4d4   :  { %2390 = vsyncpa [#allocation5], 1 }
 0x4d5   :  { %2392 = vsyncpa [#allocation5 + $0x1], 1 }

</bundles_post_ra>
